<compile_context>
chip_gen: v5e
topology: v5e:2x2
jax: 0.10.0
libtpu: 0.0.40
codegen_flags: <defaults>
</compile_context>

<pallas_src>
import numpy as np
import jax
import jax.numpy as jnp
from jax.experimental import pallas as pl
from jax.experimental.pallas import tpu as pltpu


def _round_up(x, m):
    return ((x + m - 1) // m) * m


def _device_kind():
    try:
        return jax.devices()[0].device_kind.lower()
    except Exception:
        return ""


def _default_compute_dtype():
    # bf16 is MXU-native on v6e/v7x (halves x_proj HBM stream + resident weight VMEM);
    # v5e and older lack bf16 VPU/EUP, keep f32 there.
    kind = _device_kind()
    if any(tag in kind for tag in ("v6", "v7", "7x")):
        return jnp.bfloat16
    return jnp.float32


def _pick_b_tile(B):
    bt = min(_round_up(max(B, 1), 8), 128)
    # v7x has 2 TensorCores sharing the chip: prefer >= 2 batch tiles so the "parallel"
    # grid axis actually feeds both cores (don't do this on 1-TC v5e/v6e).
    kind = _device_kind()
    if any(tag in kind for tag in ("v7", "7x")):
        if bt >= 16 and _round_up(B, bt) // bt < 2:
            bt = _round_up(bt // 2, 8)
    return bt


def lstm_pallas(x, w_ih, w_hh, b_ih, b_hh, *, t_chunk=32, b_tile=None,
                compute_dtype=None):
    """Single-layer unidirectional LSTM (batch_first) via a Pallas TPU kernel.

    x: (B, S, E) float32 embedded inputs.
    w_ih: (4H, E), w_hh: (4H, H), b_ih/b_hh: (4H,)   (PyTorch gate order i, f, g, o)
    Returns (output (B, S, H), h_n (1, B, H), c_n (1, B, H)).
    """
    B, S, E = x.shape
    H = w_hh.shape[1]

    f32 = jnp.float32
    cdt = _default_compute_dtype() if compute_dtype is None else compute_dtype
    if b_tile is None:
        b_tile = _pick_b_tile(B)
    assert b_tile % 8 == 0, "batch tile must be a multiple of 8 sublanes"

    Hp = _round_up(H, 128)            # lane-aligned hidden width
    G = 4 * Hp                        # padded gate width (lane-aligned per gate)
    Bp = _round_up(B, b_tile)         # sublane-aligned batch
    t_chunk = max(1, min(t_chunk, S))
    Sp = _round_up(S, t_chunk)
    num_b = Bp // b_tile
    num_chunks = Sp // t_chunk
    mask_tail = (Sp != S)             # static: only emit tail masking if needed
    unroll = max(1, min(8, t_chunk))  # bounded unroll keeps code size / live ranges sane

    # --- gate-wise padding so each gate occupies its own lane-aligned Hp-wide block ---
    def pad_gate_rows(w):             # (4H, ...) -> (4Hp, ...)
        w4 = w.reshape(4, H, *w.shape[1:])
        pad = [(0, 0), (0, Hp - H)] + [(0, 0)] * (w.ndim - 1)
        return jnp.pad(w4, pad).reshape(4 * Hp, *w.shape[1:])

    w_ih_p = pad_gate_rows(jnp.asarray(w_ih, f32))            # (4Hp, E)
    w_hh_p = pad_gate_rows(jnp.asarray(w_hh, f32))            # (4Hp, H)
    w_hh_p = jnp.pad(w_hh_p, ((0, 0), (0, Hp - H)))           # (4Hp, Hp)
    bias_p = pad_gate_rows(jnp.asarray(b_ih + b_hh, f32))     # (4Hp,)

    # --- hoisted input projection, emitted TIME-MAJOR directly (no transpose copy) ---
    x_f32 = jnp.asarray(x, f32)
    if cdt == jnp.bfloat16:
        x_proj = jnp.einsum('bse,ge->sbg', x_f32.astype(cdt), w_ih_p.astype(cdt),
                            preferred_element_type=f32)
        x_proj = (x_proj + bias_p).astype(cdt)                             # (S, B, 4Hp) bf16
    else:
        x_proj = jnp.einsum('bse,ge->sbg', x_f32, w_ih_p,
                            precision=jax.lax.Precision.HIGHEST) + bias_p  # (S, B, 4Hp) f32
    if Sp != S or Bp != B:
        x_proj = jnp.pad(x_proj, ((0, Sp - S), (0, Bp - B), (0, 0)))       # (Sp, Bp, 4Hp)

    whh_t = w_hh_p.T.astype(cdt)                                           # (Hp, 4Hp)

    def kernel(xp_ref, whh_hbm, out_ref, hn_ref, cn_ref,
               whh_vmem, w_sem, h_sc, c_sc):
        chunk = pl.program_id(1)
        last_chunk = pl.num_programs(1) - 1

        @pl.when(chunk == 0)           # per batch tile: fresh carries + load W_hh^T once
        def _init():
            cp = pltpu.make_async_copy(whh_hbm, whh_vmem, w_sem)
            cp.start()
            h_sc[...] = jnp.zeros_like(h_sc)
            c_sc[...] = jnp.zeros_like(c_sc)
            cp.wait()

        def step(i, carry):
            h, c = carry
            h_mx = h.astype(whh_vmem.dtype)   # bf16 only for the MXU feed on v6e/v7x

            def gate_pre(g):
                # x_proj_t[:, gate g] + h_prev @ W_hh^T[:, gate g]  (bias already folded)
                return (xp_ref[i, :, pl.ds(g * Hp, Hp)].astype(f32)
                        + jnp.dot(h_mx, whh_vmem[:, pl.ds(g * Hp, Hp)],
                                  preferred_element_type=f32))

            # PyTorch gate order i, f, g, o; sigmoid(x) == 0.5*tanh(0.5x)+0.5 (1 EUP op).
            i_g = 0.5 * jnp.tanh(0.5 * gate_pre(0)) + 0.5
            f_g = 0.5 * jnp.tanh(0.5 * gate_pre(1)) + 0.5
            g_g = jnp.tanh(gate_pre(2))
            o_g = 0.5 * jnp.tanh(0.5 * gate_pre(3)) + 0.5
            c_new = f_g * c + i_g * g_g
            h_new = o_g * jnp.tanh(c_new)
            if mask_tail:                      # freeze state on padded tail timesteps
                valid = (chunk * t_chunk + i) < S
                h_new = jnp.where(valid, h_new, h)
                c_new = jnp.where(valid, c_new, c)
            out_ref[i] = h_new.astype(out_ref.dtype)
            return h_new, c_new

        h_fin, c_fin = jax.lax.fori_loop(
            0, t_chunk, step, (h_sc[...], c_sc[...]), unroll=unroll)
        h_sc[...] = h_fin
        c_sc[...] = c_fin

        @pl.when(chunk == last_chunk)          # final states: store once per batch tile
        def _final():
            hn_ref[...] = h_sc[...].astype(hn_ref.dtype)
            cn_ref[...] = c_sc[...].astype(cn_ref.dtype)

    # Explicit scoped-VMEM budget (defaults: 16 MiB v5e / 32 MiB v6e,v7x).
    it = jnp.dtype(cdt).itemsize
    est = (2 * t_chunk * b_tile * G * it       # double-buffered x_proj blocks
           + 2 * t_chunk * b_tile * Hp * 4     # double-buffered output blocks (f32)
           + Hp * G * it                       # resident W_hh^T scratch (single buffer)
           + 2 * b_tile * Hp * 4               # h/c carries
           + 4 * b_tile * Hp * 4)              # h_n / c_n blocks
    vmem_limit = int(min(max(est * 5 // 4 + (2 << 20), 32 << 20), 120 << 20))

    grid_spec = pltpu.PrefetchScalarGridSpec(
        num_scalar_prefetch=0,
        grid=(num_b, num_chunks),              # batch tiles outermost, time chunks inner
        in_specs=[
            pl.BlockSpec((t_chunk, b_tile, G), lambda b, c: (c, b, 0)),   # x_proj chunk
            pl.BlockSpec(memory_space=pl.ANY),                            # W_hh^T (HBM)
        ],
        out_specs=[
            pl.BlockSpec((t_chunk, b_tile, Hp), lambda b, c: (c, b, 0)),  # outputs (time-major)
            pl.BlockSpec((b_tile, Hp), lambda b, c: (b, 0)),              # h_n
            pl.BlockSpec((b_tile, Hp), lambda b, c: (b, 0)),              # c_n
        ],
        scratch_shapes=[
            pltpu.VMEM((Hp, G), cdt),          # resident W_hh^T (single buffer)
            pltpu.SemaphoreType.DMA,           # its load semaphore
            pltpu.VMEM((b_tile, Hp), f32),     # h carry
            pltpu.VMEM((b_tile, Hp), f32),     # c carry
        ],
    )

    out_p, hn_p, cn_p = pl.pallas_call(
        kernel,
        out_shape=(
            jax.ShapeDtypeStruct((Sp, Bp, Hp), f32),
            jax.ShapeDtypeStruct((Bp, Hp), f32),
            jax.ShapeDtypeStruct((Bp, Hp), f32),
        ),
        grid_spec=grid_spec,
        compiler_params=pltpu.CompilerParams(
            # batch tiles are independent -> megacore-parallel (2 TCs on v7x);
            # time chunks carry the recurrence -> sequential.
            dimension_semantics=("parallel", "arbitrary"),
            vmem_limit_bytes=vmem_limit,
        ),
    )(x_proj, whh_t)

    # batch_first=True contract of nn.LSTM; consumers that accept time-major could take
    # out_p[:S, :B, :H] directly and skip this transpose.
    out = jnp.transpose(out_p[:S, :B, :H], (1, 0, 2))    # (B, S, H)
    h_n = hn_p[None, :B, :H]                             # (1, B, H)  (num_layers*dirs = 1)
    c_n = cn_p[None, :B, :H]
    return out, h_n, c_n


def lstm_encoder_forward(token_ids, emb_table, w_ih, w_hh, b_ih, b_hh):
    """Mirrors LstmEncoder.forward: embedding -> SpatialDropout (identity in eval / p=0)
    -> LSTM. Returns (output, (h_n, c_n))."""
    x = jnp.take(emb_table, token_ids, axis=0)           # (B, S, E) gather — XLA glue
    # SpatialDropout: nn.Dropout2d is identity in eval mode (and with p=0.0) -> no-op.
    out, h_n, c_n = lstm_pallas(x, w_ih, w_hh, b_ih, b_hh)
    return out, (h_n, c_n)


# ---------------------------------------------------------------------------
# Pure-JAX reference (lax.scan) for a correctness check.
# ---------------------------------------------------------------------------
def _lstm_ref(x, w_ih, w_hh, b_ih, b_hh):
    B, S, E = x.shape
    H = w_hh.shape[1]
    hp = jax.lax.Precision.HIGHEST

    def step(carry, x_t):
        h, c = carry
        gates = (jnp.dot(x_t, w_ih.T, precision=hp) + b_ih
                 + jnp.dot(h, w_hh.T, precision=hp) + b_hh)
        i, f, g, o = jnp.split(gates, 4, axis=-1)
        i, f, o = jax.nn.sigmoid(i), jax.nn.sigmoid(f), jax.nn.sigmoid(o)
        g = jnp.tanh(g)
        c = f * c + i * g
        h = o * jnp.tanh(c)
        return (h, c), h

    carry0 = (jnp.zeros((B, H), jnp.float32), jnp.zeros((B, H), jnp.float32))
    (h, c), ys = jax.lax.scan(step, carry0, jnp.swapaxes(x, 0, 1))
    return jnp.swapaxes(ys, 0, 1), h[None], c[None]


if __name__ == "__main__":
    # Small deterministic config matching the module's __init__:
    #   vocab_size=32, emb_dim=16, hidden_size=32, lstm_layers=1,
    #   spatial_dropout=0.0, bidirectional=False, padding_index=0.
    VOCAB, EMB, HIDDEN = 32, 16, 32
    B, S = 2, 8

    key = jax.random.PRNGKey(0)
    k_emb, k_wih, k_whh, k_bih, k_bhh, k_ids = jax.random.split(key, 6)

    bound = 1.0 / np.sqrt(HIDDEN)
    emb_table = jax.random.normal(k_emb, (VOCAB, EMB), jnp.float32)
    emb_table = emb_table.at[0].set(0.0)   # padding_idx=0 row is zeroed
    w_ih = jax.random.uniform(k_wih, (4 * HIDDEN, EMB), jnp.float32, -bound, bound)
    w_hh = jax.random.uniform(k_whh, (4 * HIDDEN, HIDDEN), jnp.float32, -bound, bound)
    b_ih = jax.random.uniform(k_bih, (4 * HIDDEN,), jnp.float32, -bound, bound)
    b_hh = jax.random.uniform(k_bhh, (4 * HIDDEN,), jnp.float32, -bound, bound)

    token_ids = jax.random.randint(k_ids, (B, S), 0, VOCAB, dtype=jnp.int32)

    output, (h_n, c_n) = lstm_encoder_forward(token_ids, emb_table,
                                              w_ih, w_hh, b_ih, b_hh)
    jax.block_until_ready((output, h_n, c_n))

    # Correctness check against the pure-JAX f32 reference. bf16 weights/x_proj on
    # v6e/v7x change numerics vs the f32 reference -> looser tolerances there.
    x_emb = jnp.take(emb_table, token_ids, axis=0)
    ref_out, ref_h, ref_c = _lstm_ref(x_emb, w_ih, w_hh, b_ih, b_hh)
    if _default_compute_dtype() == jnp.bfloat16:
        atol = rtol = 5e-2
    else:
        atol = rtol = 1e-5
    np.testing.assert_allclose(np.asarray(output), np.asarray(ref_out), atol=atol, rtol=rtol)
    np.testing.assert_allclose(np.asarray(h_n), np.asarray(ref_h), atol=atol, rtol=rtol)
    np.testing.assert_allclose(np.asarray(c_n), np.asarray(ref_c), atol=atol, rtol=rtol)

    print("KERNEL_OK")
</pallas_src>

<mosaic_0001>
module attributes {stable_mosaic.version = 11 : i64} {
  func.func @kernel(%arg0: i32, %arg1: i32, %arg2: memref<8x8x512xf32, #tpu.memory_space<vmem>>, %arg3: memref<128x512xf32, #tpu.memory_space<any>>, %arg4: memref<8x8x128xf32, #tpu.memory_space<vmem>>, %arg5: memref<8x128xf32, #tpu.memory_space<vmem>>, %arg6: memref<8x128xf32, #tpu.memory_space<vmem>>, %arg7: memref<128x512xf32, #tpu.memory_space<vmem>>, %arg8: memref<!tpu.dma_semaphore, #tpu.memory_space<semaphore_mem>>, %arg9: memref<8x128xf32, #tpu.memory_space<vmem>>, %arg10: memref<8x128xf32, #tpu.memory_space<vmem>>) attributes {dimension_semantics = [#tpu.dimension_semantics<parallel>, #tpu.dimension_semantics<arbitrary>], iteration_bounds = array<i64: 1, 1>, scalar_prefetch = 0 : i64, scratch_operands = 4 : i64, tpu.core_type = #tpu.core_type<tc>, window_params = [{transform_indices = @transform_0, window_bounds = array<i64: 8, 8, 512>}, {}, {transform_indices = @transform_2, window_bounds = array<i64: 8, 8, 128>}, {transform_indices = @transform_3, window_bounds = array<i64: 8, 128>}, {transform_indices = @transform_4, window_bounds = array<i64: 8, 128>}]} {
    %c0_i32 = arith.constant 0 : i32
    %0 = arith.cmpi eq, %arg1, %c0_i32 : i32
    %1 = arith.extui %0 : i1 to i32
    %c0_i32_0 = arith.constant 0 : i32
    %2 = arith.cmpi ne, %1, %c0_i32_0 : i32
    scf.if %2 {
      tpu.enqueue_dma source(%arg3 : memref<128x512xf32, #tpu.memory_space<any>>) target(%arg7 : memref<128x512xf32, #tpu.memory_space<vmem>>) target_semaphore(%arg8 : memref<!tpu.dma_semaphore, #tpu.memory_space<semaphore_mem>>)
      %cst_255 = arith.constant 0.000000e+00 : f32
      %450 = vector.broadcast %cst_255 : f32 to vector<8x128xf32>
      %c0_256 = arith.constant 0 : index
      %c0_257 = arith.constant 0 : index
      %451 = vector.load %arg9[%c0_256, %c0_257] : memref<8x128xf32, #tpu.memory_space<vmem>>, vector<8x128xf32>
      tpu.vector_store %arg9[%c0_256, %c0_257], %450 {strides = array<i32>} : memref<8x128xf32, #tpu.memory_space<vmem>>, vector<8x128xf32>,
      %cst_258 = arith.constant 0.000000e+00 : f32
      %452 = vector.broadcast %cst_258 : f32 to vector<8x128xf32>
      %c0_259 = arith.constant 0 : index
      %c0_260 = arith.constant 0 : index
      %453 = vector.load %arg10[%c0_259, %c0_260] : memref<8x128xf32, #tpu.memory_space<vmem>>, vector<8x128xf32>
      tpu.vector_store %arg10[%c0_259, %c0_260], %452 {strides = array<i32>} : memref<8x128xf32, #tpu.memory_space<vmem>>, vector<8x128xf32>,
      tpu.wait_dma2 semaphore(%arg8 : memref<!tpu.dma_semaphore, #tpu.memory_space<semaphore_mem>>) src(%arg3 : memref<128x512xf32, #tpu.memory_space<any>>) dst(%arg7 : memref<128x512xf32, #tpu.memory_space<vmem>>)
    } else {
    }
    %c0 = arith.constant 0 : index
    %c0_1 = arith.constant 0 : index
    %3 = vector.load %arg9[%c0, %c0_1] : memref<8x128xf32, #tpu.memory_space<vmem>>, vector<8x128xf32>
    %c0_2 = arith.constant 0 : index
    %c0_3 = arith.constant 0 : index
    %4 = vector.load %arg10[%c0_2, %c0_3] : memref<8x128xf32, #tpu.memory_space<vmem>>, vector<8x128xf32>
    %c0_i32_4 = arith.constant 0 : i32
    %5 = arith.index_cast %c0_i32_4 : i32 to index
    %c0_5 = arith.constant 0 : index
    %c0_6 = arith.constant 0 : index
    %6 = vector.load %arg2[%5, %c0_5, %c0_6] : memref<8x8x512xf32, #tpu.memory_space<vmem>>, vector<1x8x128xf32>
    %7 = vector.shape_cast %6 : vector<1x8x128xf32> to vector<8x128xf32>
    %c0_7 = arith.constant 0 : index
    %c0_8 = arith.constant 0 : index
    %8 = vector.load %arg7[%c0_7, %c0_8] : memref<128x512xf32, #tpu.memory_space<vmem>>, vector<128x128xf32>
    %cst = arith.constant dense<0.000000e+00> : vector<8x128xf32>
    %9 = tpu.matmul %3, %8, %cst {dimension_numbers = #tpu.dot_dimension_numbers<[1], [0], [0], [1], [0, 0, 1, 1], [], []>} : vector<8x128xf32>, vector<128x128xf32>, vector<8x128xf32> -> vector<8x128xf32>
    %10 = arith.addf %7, %9 : vector<8x128xf32>
    %cst_9 = arith.constant 5.000000e-01 : f32
    %11 = vector.broadcast %cst_9 : f32 to vector<8x128xf32>
    %12 = arith.mulf %11, %10 : vector<8x128xf32>
    %13 = math.tanh %12 : vector<8x128xf32>
    %cst_10 = arith.constant 5.000000e-01 : f32
    %14 = vector.broadcast %cst_10 : f32 to vector<8x128xf32>
    %15 = arith.mulf %14, %13 : vector<8x128xf32>
    %cst_11 = arith.constant 5.000000e-01 : f32
    %16 = vector.broadcast %cst_11 : f32 to vector<8x128xf32>
    %17 = arith.addf %15, %16 : vector<8x128xf32>
    %18 = arith.index_cast %c0_i32_4 : i32 to index
    %c0_12 = arith.constant 0 : index
    %c128 = arith.constant 128 : index
    %19 = vector.load %arg2[%18, %c0_12, %c128] : memref<8x8x512xf32, #tpu.memory_space<vmem>>, vector<1x8x128xf32>
    %20 = vector.shape_cast %19 : vector<1x8x128xf32> to vector<8x128xf32>
    %c0_13 = arith.constant 0 : index
    %c128_14 = arith.constant 128 : index
    %21 = vector.load %arg7[%c0_13, %c128_14] : memref<128x512xf32, #tpu.memory_space<vmem>>, vector<128x128xf32>
    %cst_15 = arith.constant dense<0.000000e+00> : vector<8x128xf32>
    %22 = tpu.matmul %3, %21, %cst_15 {dimension_numbers = #tpu.dot_dimension_numbers<[1], [0], [0], [1], [0, 0, 1, 1], [], []>} : vector<8x128xf32>, vector<128x128xf32>, vector<8x128xf32> -> vector<8x128xf32>
    %23 = arith.addf %20, %22 : vector<8x128xf32>
    %cst_16 = arith.constant 5.000000e-01 : f32
    %24 = vector.broadcast %cst_16 : f32 to vector<8x128xf32>
    %25 = arith.mulf %24, %23 : vector<8x128xf32>
    %26 = math.tanh %25 : vector<8x128xf32>
    %cst_17 = arith.constant 5.000000e-01 : f32
    %27 = vector.broadcast %cst_17 : f32 to vector<8x128xf32>
    %28 = arith.mulf %27, %26 : vector<8x128xf32>
    %cst_18 = arith.constant 5.000000e-01 : f32
    %29 = vector.broadcast %cst_18 : f32 to vector<8x128xf32>
    %30 = arith.addf %28, %29 : vector<8x128xf32>
    %31 = arith.index_cast %c0_i32_4 : i32 to index
    %c0_19 = arith.constant 0 : index
    %c256 = arith.constant 256 : index
    %32 = vector.load %arg2[%31, %c0_19, %c256] : memref<8x8x512xf32, #tpu.memory_space<vmem>>, vector<1x8x128xf32>
    %33 = vector.shape_cast %32 : vector<1x8x128xf32> to vector<8x128xf32>
    %c0_20 = arith.constant 0 : index
    %c256_21 = arith.constant 256 : index
    %34 = vector.load %arg7[%c0_20, %c256_21] : memref<128x512xf32, #tpu.memory_space<vmem>>, vector<128x128xf32>
    %cst_22 = arith.constant dense<0.000000e+00> : vector<8x128xf32>
    %35 = tpu.matmul %3, %34, %cst_22 {dimension_numbers = #tpu.dot_dimension_numbers<[1], [0], [0], [1], [0, 0, 1, 1], [], []>} : vector<8x128xf32>, vector<128x128xf32>, vector<8x128xf32> -> vector<8x128xf32>
    %36 = arith.addf %33, %35 : vector<8x128xf32>
    %37 = math.tanh %36 : vector<8x128xf32>
    %38 = arith.index_cast %c0_i32_4 : i32 to index
    %c0_23 = arith.constant 0 : index
    %c384 = arith.constant 384 : index
    %39 = vector.load %arg2[%38, %c0_23, %c384] : memref<8x8x512xf32, #tpu.memory_space<vmem>>, vector<1x8x128xf32>
    %40 = vector.shape_cast %39 : vector<1x8x128xf32> to vector<8x128xf32>
    %c0_24 = arith.constant 0 : index
    %c384_25 = arith.constant 384 : index
    %41 = vector.load %arg7[%c0_24, %c384_25] : memref<128x512xf32, #tpu.memory_space<vmem>>, vector<128x128xf32>
    %cst_26 = arith.constant dense<0.000000e+00> : vector<8x128xf32>
    %42 = tpu.matmul %3, %41, %cst_26 {dimension_numbers = #tpu.dot_dimension_numbers<[1], [0], [0], [1], [0, 0, 1, 1], [], []>} : vector<8x128xf32>, vector<128x128xf32>, vector<8x128xf32> -> vector<8x128xf32>
    %43 = arith.addf %40, %42 : vector<8x128xf32>
    %cst_27 = arith.constant 5.000000e-01 : f32
    %44 = vector.broadcast %cst_27 : f32 to vector<8x128xf32>
    %45 = arith.mulf %44, %43 : vector<8x128xf32>
    %46 = math.tanh %45 : vector<8x128xf32>
    %cst_28 = arith.constant 5.000000e-01 : f32
    %47 = vector.broadcast %cst_28 : f32 to vector<8x128xf32>
    %48 = arith.mulf %47, %46 : vector<8x128xf32>
    %cst_29 = arith.constant 5.000000e-01 : f32
    %49 = vector.broadcast %cst_29 : f32 to vector<8x128xf32>
    %50 = arith.addf %48, %49 : vector<8x128xf32>
    %51 = arith.mulf %30, %4 : vector<8x128xf32>
    %52 = arith.mulf %17, %37 : vector<8x128xf32>
    %53 = arith.addf %51, %52 : vector<8x128xf32>
    %54 = math.tanh %53 : vector<8x128xf32>
    %55 = arith.mulf %50, %54 : vector<8x128xf32>
    %56 = arith.index_cast %c0_i32_4 : i32 to index
    %c0_30 = arith.constant 0 : index
    %c0_31 = arith.constant 0 : index
    %57 = vector.load %arg4[%56, %c0_30, %c0_31] : memref<8x8x128xf32, #tpu.memory_space<vmem>>, vector<1x8x128xf32>
    %58 = vector.shape_cast %57 : vector<1x8x128xf32> to vector<8x128xf32>
    %59 = vector.shape_cast %55 : vector<8x128xf32> to vector<1x8x128xf32>
    tpu.vector_store %arg4[%56, %c0_30, %c0_31], %59 {strides = array<i32>} : memref<8x8x128xf32, #tpu.memory_space<vmem>>, vector<1x8x128xf32>,
    %c1_i32 = arith.constant 1 : i32
    %60 = arith.index_cast %c1_i32 : i32 to index
    %c0_32 = arith.constant 0 : index
    %c0_33 = arith.constant 0 : index
    %61 = vector.load %arg2[%60, %c0_32, %c0_33] : memref<8x8x512xf32, #tpu.memory_space<vmem>>, vector<1x8x128xf32>
    %62 = vector.shape_cast %61 : vector<1x8x128xf32> to vector<8x128xf32>
    %c0_34 = arith.constant 0 : index
    %c0_35 = arith.constant 0 : index
    %63 = vector.load %arg7[%c0_34, %c0_35] : memref<128x512xf32, #tpu.memory_space<vmem>>, vector<128x128xf32>
    %cst_36 = arith.constant dense<0.000000e+00> : vector<8x128xf32>
    %64 = tpu.matmul %55, %63, %cst_36 {dimension_numbers = #tpu.dot_dimension_numbers<[1], [0], [0], [1], [0, 0, 1, 1], [], []>} : vector<8x128xf32>, vector<128x128xf32>, vector<8x128xf32> -> vector<8x128xf32>
    %65 = arith.addf %62, %64 : vector<8x128xf32>
    %cst_37 = arith.constant 5.000000e-01 : f32
    %66 = vector.broadcast %cst_37 : f32 to vector<8x128xf32>
    %67 = arith.mulf %66, %65 : vector<8x128xf32>
    %68 = math.tanh %67 : vector<8x128xf32>
    %cst_38 = arith.constant 5.000000e-01 : f32
    %69 = vector.broadcast %cst_38 : f32 to vector<8x128xf32>
    %70 = arith.mulf %69, %68 : vector<8x128xf32>
    %cst_39 = arith.constant 5.000000e-01 : f32
    %71 = vector.broadcast %cst_39 : f32 to vector<8x128xf32>
    %72 = arith.addf %70, %71 : vector<8x128xf32>
    %73 = arith.index_cast %c1_i32 : i32 to index
    %c0_40 = arith.constant 0 : index
    %c128_41 = arith.constant 128 : index
    %74 = vector.load %arg2[%73, %c0_40, %c128_41] : memref<8x8x512xf32, #tpu.memory_space<vmem>>, vector<1x8x128xf32>
    %75 = vector.shape_cast %74 : vector<1x8x128xf32> to vector<8x128xf32>
    %c0_42 = arith.constant 0 : index
    %c128_43 = arith.constant 128 : index
    %76 = vector.load %arg7[%c0_42, %c128_43] : memref<128x512xf32, #tpu.memory_space<vmem>>, vector<128x128xf32>
    %cst_44 = arith.constant dense<0.000000e+00> : vector<8x128xf32>
    %77 = tpu.matmul %55, %76, %cst_44 {dimension_numbers = #tpu.dot_dimension_numbers<[1], [0], [0], [1], [0, 0, 1, 1], [], []>} : vector<8x128xf32>, vector<128x128xf32>, vector<8x128xf32> -> vector<8x128xf32>
    %78 = arith.addf %75, %77 : vector<8x128xf32>
    %cst_45 = arith.constant 5.000000e-01 : f32
    %79 = vector.broadcast %cst_45 : f32 to vector<8x128xf32>
    %80 = arith.mulf %79, %78 : vector<8x128xf32>
    %81 = math.tanh %80 : vector<8x128xf32>
    %cst_46 = arith.constant 5.000000e-01 : f32
    %82 = vector.broadcast %cst_46 : f32 to vector<8x128xf32>
    %83 = arith.mulf %82, %81 : vector<8x128xf32>
    %cst_47 = arith.constant 5.000000e-01 : f32
    %84 = vector.broadcast %cst_47 : f32 to vector<8x128xf32>
    %85 = arith.addf %83, %84 : vector<8x128xf32>
    %86 = arith.index_cast %c1_i32 : i32 to index
    %c0_48 = arith.constant 0 : index
    %c256_49 = arith.constant 256 : index
    %87 = vector.load %arg2[%86, %c0_48, %c256_49] : memref<8x8x512xf32, #tpu.memory_space<vmem>>, vector<1x8x128xf32>
    %88 = vector.shape_cast %87 : vector<1x8x128xf32> to vector<8x128xf32>
    %c0_50 = arith.constant 0 : index
    %c256_51 = arith.constant 256 : index
    %89 = vector.load %arg7[%c0_50, %c256_51] : memref<128x512xf32, #tpu.memory_space<vmem>>, vector<128x128xf32>
    %cst_52 = arith.constant dense<0.000000e+00> : vector<8x128xf32>
    %90 = tpu.matmul %55, %89, %cst_52 {dimension_numbers = #tpu.dot_dimension_numbers<[1], [0], [0], [1], [0, 0, 1, 1], [], []>} : vector<8x128xf32>, vector<128x128xf32>, vector<8x128xf32> -> vector<8x128xf32>
    %91 = arith.addf %88, %90 : vector<8x128xf32>
    %92 = math.tanh %91 : vector<8x128xf32>
    %93 = arith.index_cast %c1_i32 : i32 to index
    %c0_53 = arith.constant 0 : index
    %c384_54 = arith.constant 384 : index
    %94 = vector.load %arg2[%93, %c0_53, %c384_54] : memref<8x8x512xf32, #tpu.memory_space<vmem>>, vector<1x8x128xf32>
    %95 = vector.shape_cast %94 : vector<1x8x128xf32> to vector<8x128xf32>
    %c0_55 = arith.constant 0 : index
    %c384_56 = arith.constant 384 : index
    %96 = vector.load %arg7[%c0_55, %c384_56] : memref<128x512xf32, #tpu.memory_space<vmem>>, vector<128x128xf32>
    %cst_57 = arith.constant dense<0.000000e+00> : vector<8x128xf32>
    %97 = tpu.matmul %55, %96, %cst_57 {dimension_numbers = #tpu.dot_dimension_numbers<[1], [0], [0], [1], [0, 0, 1, 1], [], []>} : vector<8x128xf32>, vector<128x128xf32>, vector<8x128xf32> -> vector<8x128xf32>
    %98 = arith.addf %95, %97 : vector<8x128xf32>
    %cst_58 = arith.constant 5.000000e-01 : f32
    %99 = vector.broadcast %cst_58 : f32 to vector<8x128xf32>
    %100 = arith.mulf %99, %98 : vector<8x128xf32>
    %101 = math.tanh %100 : vector<8x128xf32>
    %cst_59 = arith.constant 5.000000e-01 : f32
    %102 = vector.broadcast %cst_59 : f32 to vector<8x128xf32>
    %103 = arith.mulf %102, %101 : vector<8x128xf32>
    %cst_60 = arith.constant 5.000000e-01 : f32
    %104 = vector.broadcast %cst_60 : f32 to vector<8x128xf32>
    %105 = arith.addf %103, %104 : vector<8x128xf32>
    %106 = arith.mulf %85, %53 : vector<8x128xf32>
    %107 = arith.mulf %72, %92 : vector<8x128xf32>
    %108 = arith.addf %106, %107 : vector<8x128xf32>
    %109 = math.tanh %108 : vector<8x128xf32>
    %110 = arith.mulf %105, %109 : vector<8x128xf32>
    %111 = arith.index_cast %c1_i32 : i32 to index
    %c0_61 = arith.constant 0 : index
    %c0_62 = arith.constant 0 : index
    %112 = vector.load %arg4[%111, %c0_61, %c0_62] : memref<8x8x128xf32, #tpu.memory_space<vmem>>, vector<1x8x128xf32>
    %113 = vector.shape_cast %112 : vector<1x8x128xf32> to vector<8x128xf32>
    %114 = vector.shape_cast %110 : vector<8x128xf32> to vector<1x8x128xf32>
    tpu.vector_store %arg4[%111, %c0_61, %c0_62], %114 {strides = array<i32>} : memref<8x8x128xf32, #tpu.memory_space<vmem>>, vector<1x8x128xf32>,
    %c2_i32 = arith.constant 2 : i32
    %115 = arith.index_cast %c2_i32 : i32 to index
    %c0_63 = arith.constant 0 : index
    %c0_64 = arith.constant 0 : index
    %116 = vector.load %arg2[%115, %c0_63, %c0_64] : memref<8x8x512xf32, #tpu.memory_space<vmem>>, vector<1x8x128xf32>
    %117 = vector.shape_cast %116 : vector<1x8x128xf32> to vector<8x128xf32>
    %c0_65 = arith.constant 0 : index
    %c0_66 = arith.constant 0 : index
    %118 = vector.load %arg7[%c0_65, %c0_66] : memref<128x512xf32, #tpu.memory_space<vmem>>, vector<128x128xf32>
    %cst_67 = arith.constant dense<0.000000e+00> : vector<8x128xf32>
    %119 = tpu.matmul %110, %118, %cst_67 {dimension_numbers = #tpu.dot_dimension_numbers<[1], [0], [0], [1], [0, 0, 1, 1], [], []>} : vector<8x128xf32>, vector<128x128xf32>, vector<8x128xf32> -> vector<8x128xf32>
    %120 = arith.addf %117, %119 : vector<8x128xf32>
    %cst_68 = arith.constant 5.000000e-01 : f32
    %121 = vector.broadcast %cst_68 : f32 to vector<8x128xf32>
    %122 = arith.mulf %121, %120 : vector<8x128xf32>
    %123 = math.tanh %122 : vector<8x128xf32>
    %cst_69 = arith.constant 5.000000e-01 : f32
    %124 = vector.broadcast %cst_69 : f32 to vector<8x128xf32>
    %125 = arith.mulf %124, %123 : vector<8x128xf32>
    %cst_70 = arith.constant 5.000000e-01 : f32
    %126 = vector.broadcast %cst_70 : f32 to vector<8x128xf32>
    %127 = arith.addf %125, %126 : vector<8x128xf32>
    %128 = arith.index_cast %c2_i32 : i32 to index
    %c0_71 = arith.constant 0 : index
    %c128_72 = arith.constant 128 : index
    %129 = vector.load %arg2[%128, %c0_71, %c128_72] : memref<8x8x512xf32, #tpu.memory_space<vmem>>, vector<1x8x128xf32>
    %130 = vector.shape_cast %129 : vector<1x8x128xf32> to vector<8x128xf32>
    %c0_73 = arith.constant 0 : index
    %c128_74 = arith.constant 128 : index
    %131 = vector.load %arg7[%c0_73, %c128_74] : memref<128x512xf32, #tpu.memory_space<vmem>>, vector<128x128xf32>
    %cst_75 = arith.constant dense<0.000000e+00> : vector<8x128xf32>
    %132 = tpu.matmul %110, %131, %cst_75 {dimension_numbers = #tpu.dot_dimension_numbers<[1], [0], [0], [1], [0, 0, 1, 1], [], []>} : vector<8x128xf32>, vector<128x128xf32>, vector<8x128xf32> -> vector<8x128xf32>
    %133 = arith.addf %130, %132 : vector<8x128xf32>
    %cst_76 = arith.constant 5.000000e-01 : f32
    %134 = vector.broadcast %cst_76 : f32 to vector<8x128xf32>
    %135 = arith.mulf %134, %133 : vector<8x128xf32>
    %136 = math.tanh %135 : vector<8x128xf32>
    %cst_77 = arith.constant 5.000000e-01 : f32
    %137 = vector.broadcast %cst_77 : f32 to vector<8x128xf32>
    %138 = arith.mulf %137, %136 : vector<8x128xf32>
    %cst_78 = arith.constant 5.000000e-01 : f32
    %139 = vector.broadcast %cst_78 : f32 to vector<8x128xf32>
    %140 = arith.addf %138, %139 : vector<8x128xf32>
    %141 = arith.index_cast %c2_i32 : i32 to index
    %c0_79 = arith.constant 0 : index
    %c256_80 = arith.constant 256 : index
    %142 = vector.load %arg2[%141, %c0_79, %c256_80] : memref<8x8x512xf32, #tpu.memory_space<vmem>>, vector<1x8x128xf32>
    %143 = vector.shape_cast %142 : vector<1x8x128xf32> to vector<8x128xf32>
    %c0_81 = arith.constant 0 : index
    %c256_82 = arith.constant 256 : index
    %144 = vector.load %arg7[%c0_81, %c256_82] : memref<128x512xf32, #tpu.memory_space<vmem>>, vector<128x128xf32>
    %cst_83 = arith.constant dense<0.000000e+00> : vector<8x128xf32>
    %145 = tpu.matmul %110, %144, %cst_83 {dimension_numbers = #tpu.dot_dimension_numbers<[1], [0], [0], [1], [0, 0, 1, 1], [], []>} : vector<8x128xf32>, vector<128x128xf32>, vector<8x128xf32> -> vector<8x128xf32>
    %146 = arith.addf %143, %145 : vector<8x128xf32>
    %147 = math.tanh %146 : vector<8x128xf32>
    %148 = arith.index_cast %c2_i32 : i32 to index
    %c0_84 = arith.constant 0 : index
    %c384_85 = arith.constant 384 : index
    %149 = vector.load %arg2[%148, %c0_84, %c384_85] : memref<8x8x512xf32, #tpu.memory_space<vmem>>, vector<1x8x128xf32>
    %150 = vector.shape_cast %149 : vector<1x8x128xf32> to vector<8x128xf32>
    %c0_86 = arith.constant 0 : index
    %c384_87 = arith.constant 384 : index
    %151 = vector.load %arg7[%c0_86, %c384_87] : memref<128x512xf32, #tpu.memory_space<vmem>>, vector<128x128xf32>
    %cst_88 = arith.constant dense<0.000000e+00> : vector<8x128xf32>
    %152 = tpu.matmul %110, %151, %cst_88 {dimension_numbers = #tpu.dot_dimension_numbers<[1], [0], [0], [1], [0, 0, 1, 1], [], []>} : vector<8x128xf32>, vector<128x128xf32>, vector<8x128xf32> -> vector<8x128xf32>
    %153 = arith.addf %150, %152 : vector<8x128xf32>
    %cst_89 = arith.constant 5.000000e-01 : f32
    %154 = vector.broadcast %cst_89 : f32 to vector<8x128xf32>
    %155 = arith.mulf %154, %153 : vector<8x128xf32>
    %156 = math.tanh %155 : vector<8x128xf32>
    %cst_90 = arith.constant 5.000000e-01 : f32
    %157 = vector.broadcast %cst_90 : f32 to vector<8x128xf32>
    %158 = arith.mulf %157, %156 : vector<8x128xf32>
    %cst_91 = arith.constant 5.000000e-01 : f32
    %159 = vector.broadcast %cst_91 : f32 to vector<8x128xf32>
    %160 = arith.addf %158, %159 : vector<8x128xf32>
    %161 = arith.mulf %140, %108 : vector<8x128xf32>
    %162 = arith.mulf %127, %147 : vector<8x128xf32>
    %163 = arith.addf %161, %162 : vector<8x128xf32>
    %164 = math.tanh %163 : vector<8x128xf32>
    %165 = arith.mulf %160, %164 : vector<8x128xf32>
    %166 = arith.index_cast %c2_i32 : i32 to index
    %c0_92 = arith.constant 0 : index
    %c0_93 = arith.constant 0 : index
    %167 = vector.load %arg4[%166, %c0_92, %c0_93] : memref<8x8x128xf32, #tpu.memory_space<vmem>>, vector<1x8x128xf32>
    %168 = vector.shape_cast %167 : vector<1x8x128xf32> to vector<8x128xf32>
    %169 = vector.shape_cast %165 : vector<8x128xf32> to vector<1x8x128xf32>
    tpu.vector_store %arg4[%166, %c0_92, %c0_93], %169 {strides = array<i32>} : memref<8x8x128xf32, #tpu.memory_space<vmem>>, vector<1x8x128xf32>,
    %c3_i32 = arith.constant 3 : i32
    %170 = arith.index_cast %c3_i32 : i32 to index
    %c0_94 = arith.constant 0 : index
    %c0_95 = arith.constant 0 : index
    %171 = vector.load %arg2[%170, %c0_94, %c0_95] : memref<8x8x512xf32, #tpu.memory_space<vmem>>, vector<1x8x128xf32>
    %172 = vector.shape_cast %171 : vector<1x8x128xf32> to vector<8x128xf32>
    %c0_96 = arith.constant 0 : index
    %c0_97 = arith.constant 0 : index
    %173 = vector.load %arg7[%c0_96, %c0_97] : memref<128x512xf32, #tpu.memory_space<vmem>>, vector<128x128xf32>
    %cst_98 = arith.constant dense<0.000000e+00> : vector<8x128xf32>
    %174 = tpu.matmul %165, %173, %cst_98 {dimension_numbers = #tpu.dot_dimension_numbers<[1], [0], [0], [1], [0, 0, 1, 1], [], []>} : vector<8x128xf32>, vector<128x128xf32>, vector<8x128xf32> -> vector<8x128xf32>
    %175 = arith.addf %172, %174 : vector<8x128xf32>
    %cst_99 = arith.constant 5.000000e-01 : f32
    %176 = vector.broadcast %cst_99 : f32 to vector<8x128xf32>
    %177 = arith.mulf %176, %175 : vector<8x128xf32>
    %178 = math.tanh %177 : vector<8x128xf32>
    %cst_100 = arith.constant 5.000000e-01 : f32
    %179 = vector.broadcast %cst_100 : f32 to vector<8x128xf32>
    %180 = arith.mulf %179, %178 : vector<8x128xf32>
    %cst_101 = arith.constant 5.000000e-01 : f32
    %181 = vector.broadcast %cst_101 : f32 to vector<8x128xf32>
    %182 = arith.addf %180, %181 : vector<8x128xf32>
    %183 = arith.index_cast %c3_i32 : i32 to index
    %c0_102 = arith.constant 0 : index
    %c128_103 = arith.constant 128 : index
    %184 = vector.load %arg2[%183, %c0_102, %c128_103] : memref<8x8x512xf32, #tpu.memory_space<vmem>>, vector<1x8x128xf32>
    %185 = vector.shape_cast %184 : vector<1x8x128xf32> to vector<8x128xf32>
    %c0_104 = arith.constant 0 : index
    %c128_105 = arith.constant 128 : index
    %186 = vector.load %arg7[%c0_104, %c128_105] : memref<128x512xf32, #tpu.memory_space<vmem>>, vector<128x128xf32>
    %cst_106 = arith.constant dense<0.000000e+00> : vector<8x128xf32>
    %187 = tpu.matmul %165, %186, %cst_106 {dimension_numbers = #tpu.dot_dimension_numbers<[1], [0], [0], [1], [0, 0, 1, 1], [], []>} : vector<8x128xf32>, vector<128x128xf32>, vector<8x128xf32> -> vector<8x128xf32>
    %188 = arith.addf %185, %187 : vector<8x128xf32>
    %cst_107 = arith.constant 5.000000e-01 : f32
    %189 = vector.broadcast %cst_107 : f32 to vector<8x128xf32>
    %190 = arith.mulf %189, %188 : vector<8x128xf32>
    %191 = math.tanh %190 : vector<8x128xf32>
    %cst_108 = arith.constant 5.000000e-01 : f32
    %192 = vector.broadcast %cst_108 : f32 to vector<8x128xf32>
    %193 = arith.mulf %192, %191 : vector<8x128xf32>
    %cst_109 = arith.constant 5.000000e-01 : f32
    %194 = vector.broadcast %cst_109 : f32 to vector<8x128xf32>
    %195 = arith.addf %193, %194 : vector<8x128xf32>
    %196 = arith.index_cast %c3_i32 : i32 to index
    %c0_110 = arith.constant 0 : index
    %c256_111 = arith.constant 256 : index
    %197 = vector.load %arg2[%196, %c0_110, %c256_111] : memref<8x8x512xf32, #tpu.memory_space<vmem>>, vector<1x8x128xf32>
    %198 = vector.shape_cast %197 : vector<1x8x128xf32> to vector<8x128xf32>
    %c0_112 = arith.constant 0 : index
    %c256_113 = arith.constant 256 : index
    %199 = vector.load %arg7[%c0_112, %c256_113] : memref<128x512xf32, #tpu.memory_space<vmem>>, vector<128x128xf32>
    %cst_114 = arith.constant dense<0.000000e+00> : vector<8x128xf32>
    %200 = tpu.matmul %165, %199, %cst_114 {dimension_numbers = #tpu.dot_dimension_numbers<[1], [0], [0], [1], [0, 0, 1, 1], [], []>} : vector<8x128xf32>, vector<128x128xf32>, vector<8x128xf32> -> vector<8x128xf32>
    %201 = arith.addf %198, %200 : vector<8x128xf32>
    %202 = math.tanh %201 : vector<8x128xf32>
    %203 = arith.index_cast %c3_i32 : i32 to index
    %c0_115 = arith.constant 0 : index
    %c384_116 = arith.constant 384 : index
    %204 = vector.load %arg2[%203, %c0_115, %c384_116] : memref<8x8x512xf32, #tpu.memory_space<vmem>>, vector<1x8x128xf32>
    %205 = vector.shape_cast %204 : vector<1x8x128xf32> to vector<8x128xf32>
    %c0_117 = arith.constant 0 : index
    %c384_118 = arith.constant 384 : index
    %206 = vector.load %arg7[%c0_117, %c384_118] : memref<128x512xf32, #tpu.memory_space<vmem>>, vector<128x128xf32>
    %cst_119 = arith.constant dense<0.000000e+00> : vector<8x128xf32>
    %207 = tpu.matmul %165, %206, %cst_119 {dimension_numbers = #tpu.dot_dimension_numbers<[1], [0], [0], [1], [0, 0, 1, 1], [], []>} : vector<8x128xf32>, vector<128x128xf32>, vector<8x128xf32> -> vector<8x128xf32>
    %208 = arith.addf %205, %207 : vector<8x128xf32>
    %cst_120 = arith.constant 5.000000e-01 : f32
    %209 = vector.broadcast %cst_120 : f32 to vector<8x128xf32>
    %210 = arith.mulf %209, %208 : vector<8x128xf32>
    %211 = math.tanh %210 : vector<8x128xf32>
    %cst_121 = arith.constant 5.000000e-01 : f32
    %212 = vector.broadcast %cst_121 : f32 to vector<8x128xf32>
    %213 = arith.mulf %212, %211 : vector<8x128xf32>
    %cst_122 = arith.constant 5.000000e-01 : f32
    %214 = vector.broadcast %cst_122 : f32 to vector<8x128xf32>
    %215 = arith.addf %213, %214 : vector<8x128xf32>
    %216 = arith.mulf %195, %163 : vector<8x128xf32>
    %217 = arith.mulf %182, %202 : vector<8x128xf32>
    %218 = arith.addf %216, %217 : vector<8x128xf32>
    %219 = math.tanh %218 : vector<8x128xf32>
    %220 = arith.mulf %215, %219 : vector<8x128xf32>
    %221 = arith.index_cast %c3_i32 : i32 to index
    %c0_123 = arith.constant 0 : index
    %c0_124 = arith.constant 0 : index
    %222 = vector.load %arg4[%221, %c0_123, %c0_124] : memref<8x8x128xf32, #tpu.memory_space<vmem>>, vector<1x8x128xf32>
    %223 = vector.shape_cast %222 : vector<1x8x128xf32> to vector<8x128xf32>
    %224 = vector.shape_cast %220 : vector<8x128xf32> to vector<1x8x128xf32>
    tpu.vector_store %arg4[%221, %c0_123, %c0_124], %224 {strides = array<i32>} : memref<8x8x128xf32, #tpu.memory_space<vmem>>, vector<1x8x128xf32>,
    %c4_i32 = arith.constant 4 : i32
    %225 = arith.index_cast %c4_i32 : i32 to index
    %c0_125 = arith.constant 0 : index
    %c0_126 = arith.constant 0 : index
    %226 = vector.load %arg2[%225, %c0_125, %c0_126] : memref<8x8x512xf32, #tpu.memory_space<vmem>>, vector<1x8x128xf32>
    %227 = vector.shape_cast %226 : vector<1x8x128xf32> to vector<8x128xf32>
    %c0_127 = arith.constant 0 : index
    %c0_128 = arith.constant 0 : index
    %228 = vector.load %arg7[%c0_127, %c0_128] : memref<128x512xf32, #tpu.memory_space<vmem>>, vector<128x128xf32>
    %cst_129 = arith.constant dense<0.000000e+00> : vector<8x128xf32>
    %229 = tpu.matmul %220, %228, %cst_129 {dimension_numbers = #tpu.dot_dimension_numbers<[1], [0], [0], [1], [0, 0, 1, 1], [], []>} : vector<8x128xf32>, vector<128x128xf32>, vector<8x128xf32> -> vector<8x128xf32>
    %230 = arith.addf %227, %229 : vector<8x128xf32>
    %cst_130 = arith.constant 5.000000e-01 : f32
    %231 = vector.broadcast %cst_130 : f32 to vector<8x128xf32>
    %232 = arith.mulf %231, %230 : vector<8x128xf32>
    %233 = math.tanh %232 : vector<8x128xf32>
    %cst_131 = arith.constant 5.000000e-01 : f32
    %234 = vector.broadcast %cst_131 : f32 to vector<8x128xf32>
    %235 = arith.mulf %234, %233 : vector<8x128xf32>
    %cst_132 = arith.constant 5.000000e-01 : f32
    %236 = vector.broadcast %cst_132 : f32 to vector<8x128xf32>
    %237 = arith.addf %235, %236 : vector<8x128xf32>
    %238 = arith.index_cast %c4_i32 : i32 to index
    %c0_133 = arith.constant 0 : index
    %c128_134 = arith.constant 128 : index
    %239 = vector.load %arg2[%238, %c0_133, %c128_134] : memref<8x8x512xf32, #tpu.memory_space<vmem>>, vector<1x8x128xf32>
    %240 = vector.shape_cast %239 : vector<1x8x128xf32> to vector<8x128xf32>
    %c0_135 = arith.constant 0 : index
    %c128_136 = arith.constant 128 : index
    %241 = vector.load %arg7[%c0_135, %c128_136] : memref<128x512xf32, #tpu.memory_space<vmem>>, vector<128x128xf32>
    %cst_137 = arith.constant dense<0.000000e+00> : vector<8x128xf32>
    %242 = tpu.matmul %220, %241, %cst_137 {dimension_numbers = #tpu.dot_dimension_numbers<[1], [0], [0], [1], [0, 0, 1, 1], [], []>} : vector<8x128xf32>, vector<128x128xf32>, vector<8x128xf32> -> vector<8x128xf32>
    %243 = arith.addf %240, %242 : vector<8x128xf32>
    %cst_138 = arith.constant 5.000000e-01 : f32
    %244 = vector.broadcast %cst_138 : f32 to vector<8x128xf32>
    %245 = arith.mulf %244, %243 : vector<8x128xf32>
    %246 = math.tanh %245 : vector<8x128xf32>
    %cst_139 = arith.constant 5.000000e-01 : f32
    %247 = vector.broadcast %cst_139 : f32 to vector<8x128xf32>
    %248 = arith.mulf %247, %246 : vector<8x128xf32>
    %cst_140 = arith.constant 5.000000e-01 : f32
    %249 = vector.broadcast %cst_140 : f32 to vector<8x128xf32>
    %250 = arith.addf %248, %249 : vector<8x128xf32>
    %251 = arith.index_cast %c4_i32 : i32 to index
    %c0_141 = arith.constant 0 : index
    %c256_142 = arith.constant 256 : index
    %252 = vector.load %arg2[%251, %c0_141, %c256_142] : memref<8x8x512xf32, #tpu.memory_space<vmem>>, vector<1x8x128xf32>
    %253 = vector.shape_cast %252 : vector<1x8x128xf32> to vector<8x128xf32>
    %c0_143 = arith.constant 0 : index
    %c256_144 = arith.constant 256 : index
    %254 = vector.load %arg7[%c0_143, %c256_144] : memref<128x512xf32, #tpu.memory_space<vmem>>, vector<128x128xf32>
    %cst_145 = arith.constant dense<0.000000e+00> : vector<8x128xf32>
    %255 = tpu.matmul %220, %254, %cst_145 {dimension_numbers = #tpu.dot_dimension_numbers<[1], [0], [0], [1], [0, 0, 1, 1], [], []>} : vector<8x128xf32>, vector<128x128xf32>, vector<8x128xf32> -> vector<8x128xf32>
    %256 = arith.addf %253, %255 : vector<8x128xf32>
    %257 = math.tanh %256 : vector<8x128xf32>
    %258 = arith.index_cast %c4_i32 : i32 to index
    %c0_146 = arith.constant 0 : index
    %c384_147 = arith.constant 384 : index
    %259 = vector.load %arg2[%258, %c0_146, %c384_147] : memref<8x8x512xf32, #tpu.memory_space<vmem>>, vector<1x8x128xf32>
    %260 = vector.shape_cast %259 : vector<1x8x128xf32> to vector<8x128xf32>
    %c0_148 = arith.constant 0 : index
    %c384_149 = arith.constant 384 : index
    %261 = vector.load %arg7[%c0_148, %c384_149] : memref<128x512xf32, #tpu.memory_space<vmem>>, vector<128x128xf32>
    %cst_150 = arith.constant dense<0.000000e+00> : vector<8x128xf32>
    %262 = tpu.matmul %220, %261, %cst_150 {dimension_numbers = #tpu.dot_dimension_numbers<[1], [0], [0], [1], [0, 0, 1, 1], [], []>} : vector<8x128xf32>, vector<128x128xf32>, vector<8x128xf32> -> vector<8x128xf32>
    %263 = arith.addf %260, %262 : vector<8x128xf32>
    %cst_151 = arith.constant 5.000000e-01 : f32
    %264 = vector.broadcast %cst_151 : f32 to vector<8x128xf32>
    %265 = arith.mulf %264, %263 : vector<8x128xf32>
    %266 = math.tanh %265 : vector<8x128xf32>
    %cst_152 = arith.constant 5.000000e-01 : f32
    %267 = vector.broadcast %cst_152 : f32 to vector<8x128xf32>
    %268 = arith.mulf %267, %266 : vector<8x128xf32>
    %cst_153 = arith.constant 5.000000e-01 : f32
    %269 = vector.broadcast %cst_153 : f32 to vector<8x128xf32>
    %270 = arith.addf %268, %269 : vector<8x128xf32>
    %271 = arith.mulf %250, %218 : vector<8x128xf32>
    %272 = arith.mulf %237, %257 : vector<8x128xf32>
    %273 = arith.addf %271, %272 : vector<8x128xf32>
    %274 = math.tanh %273 : vector<8x128xf32>
    %275 = arith.mulf %270, %274 : vector<8x128xf32>
    %276 = arith.index_cast %c4_i32 : i32 to index
    %c0_154 = arith.constant 0 : index
    %c0_155 = arith.constant 0 : index
    %277 = vector.load %arg4[%276, %c0_154, %c0_155] : memref<8x8x128xf32, #tpu.memory_space<vmem>>, vector<1x8x128xf32>
    %278 = vector.shape_cast %277 : vector<1x8x128xf32> to vector<8x128xf32>
    %279 = vector.shape_cast %275 : vector<8x128xf32> to vector<1x8x128xf32>
    tpu.vector_store %arg4[%276, %c0_154, %c0_155], %279 {strides = array<i32>} : memref<8x8x128xf32, #tpu.memory_space<vmem>>, vector<1x8x128xf32>,
    %c5_i32 = arith.constant 5 : i32
    %280 = arith.index_cast %c5_i32 : i32 to index
    %c0_156 = arith.constant 0 : index
    %c0_157 = arith.constant 0 : index
    %281 = vector.load %arg2[%280, %c0_156, %c0_157] : memref<8x8x512xf32, #tpu.memory_space<vmem>>, vector<1x8x128xf32>
    %282 = vector.shape_cast %281 : vector<1x8x128xf32> to vector<8x128xf32>
    %c0_158 = arith.constant 0 : index
    %c0_159 = arith.constant 0 : index
    %283 = vector.load %arg7[%c0_158, %c0_159] : memref<128x512xf32, #tpu.memory_space<vmem>>, vector<128x128xf32>
    %cst_160 = arith.constant dense<0.000000e+00> : vector<8x128xf32>
    %284 = tpu.matmul %275, %283, %cst_160 {dimension_numbers = #tpu.dot_dimension_numbers<[1], [0], [0], [1], [0, 0, 1, 1], [], []>} : vector<8x128xf32>, vector<128x128xf32>, vector<8x128xf32> -> vector<8x128xf32>
    %285 = arith.addf %282, %284 : vector<8x128xf32>
    %cst_161 = arith.constant 5.000000e-01 : f32
    %286 = vector.broadcast %cst_161 : f32 to vector<8x128xf32>
    %287 = arith.mulf %286, %285 : vector<8x128xf32>
    %288 = math.tanh %287 : vector<8x128xf32>
    %cst_162 = arith.constant 5.000000e-01 : f32
    %289 = vector.broadcast %cst_162 : f32 to vector<8x128xf32>
    %290 = arith.mulf %289, %288 : vector<8x128xf32>
    %cst_163 = arith.constant 5.000000e-01 : f32
    %291 = vector.broadcast %cst_163 : f32 to vector<8x128xf32>
    %292 = arith.addf %290, %291 : vector<8x128xf32>
    %293 = arith.index_cast %c5_i32 : i32 to index
    %c0_164 = arith.constant 0 : index
    %c128_165 = arith.constant 128 : index
    %294 = vector.load %arg2[%293, %c0_164, %c128_165] : memref<8x8x512xf32, #tpu.memory_space<vmem>>, vector<1x8x128xf32>
    %295 = vector.shape_cast %294 : vector<1x8x128xf32> to vector<8x128xf32>
    %c0_166 = arith.constant 0 : index
    %c128_167 = arith.constant 128 : index
    %296 = vector.load %arg7[%c0_166, %c128_167] : memref<128x512xf32, #tpu.memory_space<vmem>>, vector<128x128xf32>
    %cst_168 = arith.constant dense<0.000000e+00> : vector<8x128xf32>
    %297 = tpu.matmul %275, %296, %cst_168 {dimension_numbers = #tpu.dot_dimension_numbers<[1], [0], [0], [1], [0, 0, 1, 1], [], []>} : vector<8x128xf32>, vector<128x128xf32>, vector<8x128xf32> -> vector<8x128xf32>
    %298 = arith.addf %295, %297 : vector<8x128xf32>
    %cst_169 = arith.constant 5.000000e-01 : f32
    %299 = vector.broadcast %cst_169 : f32 to vector<8x128xf32>
    %300 = arith.mulf %299, %298 : vector<8x128xf32>
    %301 = math.tanh %300 : vector<8x128xf32>
    %cst_170 = arith.constant 5.000000e-01 : f32
    %302 = vector.broadcast %cst_170 : f32 to vector<8x128xf32>
    %303 = arith.mulf %302, %301 : vector<8x128xf32>
    %cst_171 = arith.constant 5.000000e-01 : f32
    %304 = vector.broadcast %cst_171 : f32 to vector<8x128xf32>
    %305 = arith.addf %303, %304 : vector<8x128xf32>
    %306 = arith.index_cast %c5_i32 : i32 to index
    %c0_172 = arith.constant 0 : index
    %c256_173 = arith.constant 256 : index
    %307 = vector.load %arg2[%306, %c0_172, %c256_173] : memref<8x8x512xf32, #tpu.memory_space<vmem>>, vector<1x8x128xf32>
    %308 = vector.shape_cast %307 : vector<1x8x128xf32> to vector<8x128xf32>
    %c0_174 = arith.constant 0 : index
    %c256_175 = arith.constant 256 : index
    %309 = vector.load %arg7[%c0_174, %c256_175] : memref<128x512xf32, #tpu.memory_space<vmem>>, vector<128x128xf32>
    %cst_176 = arith.constant dense<0.000000e+00> : vector<8x128xf32>
    %310 = tpu.matmul %275, %309, %cst_176 {dimension_numbers = #tpu.dot_dimension_numbers<[1], [0], [0], [1], [0, 0, 1, 1], [], []>} : vector<8x128xf32>, vector<128x128xf32>, vector<8x128xf32> -> vector<8x128xf32>
    %311 = arith.addf %308, %310 : vector<8x128xf32>
    %312 = math.tanh %311 : vector<8x128xf32>
    %313 = arith.index_cast %c5_i32 : i32 to index
    %c0_177 = arith.constant 0 : index
    %c384_178 = arith.constant 384 : index
    %314 = vector.load %arg2[%313, %c0_177, %c384_178] : memref<8x8x512xf32, #tpu.memory_space<vmem>>, vector<1x8x128xf32>
    %315 = vector.shape_cast %314 : vector<1x8x128xf32> to vector<8x128xf32>
    %c0_179 = arith.constant 0 : index
    %c384_180 = arith.constant 384 : index
    %316 = vector.load %arg7[%c0_179, %c384_180] : memref<128x512xf32, #tpu.memory_space<vmem>>, vector<128x128xf32>
    %cst_181 = arith.constant dense<0.000000e+00> : vector<8x128xf32>
    %317 = tpu.matmul %275, %316, %cst_181 {dimension_numbers = #tpu.dot_dimension_numbers<[1], [0], [0], [1], [0, 0, 1, 1], [], []>} : vector<8x128xf32>, vector<128x128xf32>, vector<8x128xf32> -> vector<8x128xf32>
    %318 = arith.addf %315, %317 : vector<8x128xf32>
    %cst_182 = arith.constant 5.000000e-01 : f32
    %319 = vector.broadcast %cst_182 : f32 to vector<8x128xf32>
    %320 = arith.mulf %319, %318 : vector<8x128xf32>
    %321 = math.tanh %320 : vector<8x128xf32>
    %cst_183 = arith.constant 5.000000e-01 : f32
    %322 = vector.broadcast %cst_183 : f32 to vector<8x128xf32>
    %323 = arith.mulf %322, %321 : vector<8x128xf32>
    %cst_184 = arith.constant 5.000000e-01 : f32
    %324 = vector.broadcast %cst_184 : f32 to vector<8x128xf32>
    %325 = arith.addf %323, %324 : vector<8x128xf32>
    %326 = arith.mulf %305, %273 : vector<8x128xf32>
    %327 = arith.mulf %292, %312 : vector<8x128xf32>
    %328 = arith.addf %326, %327 : vector<8x128xf32>
    %329 = math.tanh %328 : vector<8x128xf32>
    %330 = arith.mulf %325, %329 : vector<8x128xf32>
    %331 = arith.index_cast %c5_i32 : i32 to index
    %c0_185 = arith.constant 0 : index
    %c0_186 = arith.constant 0 : index
    %332 = vector.load %arg4[%331, %c0_185, %c0_186] : memref<8x8x128xf32, #tpu.memory_space<vmem>>, vector<1x8x128xf32>
    %333 = vector.shape_cast %332 : vector<1x8x128xf32> to vector<8x128xf32>
    %334 = vector.shape_cast %330 : vector<8x128xf32> to vector<1x8x128xf32>
    tpu.vector_store %arg4[%331, %c0_185, %c0_186], %334 {strides = array<i32>} : memref<8x8x128xf32, #tpu.memory_space<vmem>>, vector<1x8x128xf32>,
    %c6_i32 = arith.constant 6 : i32
    %335 = arith.index_cast %c6_i32 : i32 to index
    %c0_187 = arith.constant 0 : index
    %c0_188 = arith.constant 0 : index
    %336 = vector.load %arg2[%335, %c0_187, %c0_188] : memref<8x8x512xf32, #tpu.memory_space<vmem>>, vector<1x8x128xf32>
    %337 = vector.shape_cast %336 : vector<1x8x128xf32> to vector<8x128xf32>
    %c0_189 = arith.constant 0 : index
    %c0_190 = arith.constant 0 : index
    %338 = vector.load %arg7[%c0_189, %c0_190] : memref<128x512xf32, #tpu.memory_space<vmem>>, vector<128x128xf32>
    %cst_191 = arith.constant dense<0.000000e+00> : vector<8x128xf32>
    %339 = tpu.matmul %330, %338, %cst_191 {dimension_numbers = #tpu.dot_dimension_numbers<[1], [0], [0], [1], [0, 0, 1, 1], [], []>} : vector<8x128xf32>, vector<128x128xf32>, vector<8x128xf32> -> vector<8x128xf32>
    %340 = arith.addf %337, %339 : vector<8x128xf32>
    %cst_192 = arith.constant 5.000000e-01 : f32
    %341 = vector.broadcast %cst_192 : f32 to vector<8x128xf32>
    %342 = arith.mulf %341, %340 : vector<8x128xf32>
    %343 = math.tanh %342 : vector<8x128xf32>
    %cst_193 = arith.constant 5.000000e-01 : f32
    %344 = vector.broadcast %cst_193 : f32 to vector<8x128xf32>
    %345 = arith.mulf %344, %343 : vector<8x128xf32>
    %cst_194 = arith.constant 5.000000e-01 : f32
    %346 = vector.broadcast %cst_194 : f32 to vector<8x128xf32>
    %347 = arith.addf %345, %346 : vector<8x128xf32>
    %348 = arith.index_cast %c6_i32 : i32 to index
    %c0_195 = arith.constant 0 : index
    %c128_196 = arith.constant 128 : index
    %349 = vector.load %arg2[%348, %c0_195, %c128_196] : memref<8x8x512xf32, #tpu.memory_space<vmem>>, vector<1x8x128xf32>
    %350 = vector.shape_cast %349 : vector<1x8x128xf32> to vector<8x128xf32>
    %c0_197 = arith.constant 0 : index
    %c128_198 = arith.constant 128 : index
    %351 = vector.load %arg7[%c0_197, %c128_198] : memref<128x512xf32, #tpu.memory_space<vmem>>, vector<128x128xf32>
    %cst_199 = arith.constant dense<0.000000e+00> : vector<8x128xf32>
    %352 = tpu.matmul %330, %351, %cst_199 {dimension_numbers = #tpu.dot_dimension_numbers<[1], [0], [0], [1], [0, 0, 1, 1], [], []>} : vector<8x128xf32>, vector<128x128xf32>, vector<8x128xf32> -> vector<8x128xf32>
    %353 = arith.addf %350, %352 : vector<8x128xf32>
    %cst_200 = arith.constant 5.000000e-01 : f32
    %354 = vector.broadcast %cst_200 : f32 to vector<8x128xf32>
    %355 = arith.mulf %354, %353 : vector<8x128xf32>
    %356 = math.tanh %355 : vector<8x128xf32>
    %cst_201 = arith.constant 5.000000e-01 : f32
    %357 = vector.broadcast %cst_201 : f32 to vector<8x128xf32>
    %358 = arith.mulf %357, %356 : vector<8x128xf32>
    %cst_202 = arith.constant 5.000000e-01 : f32
    %359 = vector.broadcast %cst_202 : f32 to vector<8x128xf32>
    %360 = arith.addf %358, %359 : vector<8x128xf32>
    %361 = arith.index_cast %c6_i32 : i32 to index
    %c0_203 = arith.constant 0 : index
    %c256_204 = arith.constant 256 : index
    %362 = vector.load %arg2[%361, %c0_203, %c256_204] : memref<8x8x512xf32, #tpu.memory_space<vmem>>, vector<1x8x128xf32>
    %363 = vector.shape_cast %362 : vector<1x8x128xf32> to vector<8x128xf32>
    %c0_205 = arith.constant 0 : index
    %c256_206 = arith.constant 256 : index
    %364 = vector.load %arg7[%c0_205, %c256_206] : memref<128x512xf32, #tpu.memory_space<vmem>>, vector<128x128xf32>
    %cst_207 = arith.constant dense<0.000000e+00> : vector<8x128xf32>
    %365 = tpu.matmul %330, %364, %cst_207 {dimension_numbers = #tpu.dot_dimension_numbers<[1], [0], [0], [1], [0, 0, 1, 1], [], []>} : vector<8x128xf32>, vector<128x128xf32>, vector<8x128xf32> -> vector<8x128xf32>
    %366 = arith.addf %363, %365 : vector<8x128xf32>
    %367 = math.tanh %366 : vector<8x128xf32>
    %368 = arith.index_cast %c6_i32 : i32 to index
    %c0_208 = arith.constant 0 : index
    %c384_209 = arith.constant 384 : index
    %369 = vector.load %arg2[%368, %c0_208, %c384_209] : memref<8x8x512xf32, #tpu.memory_space<vmem>>, vector<1x8x128xf32>
    %370 = vector.shape_cast %369 : vector<1x8x128xf32> to vector<8x128xf32>
    %c0_210 = arith.constant 0 : index
    %c384_211 = arith.constant 384 : index
    %371 = vector.load %arg7[%c0_210, %c384_211] : memref<128x512xf32, #tpu.memory_space<vmem>>, vector<128x128xf32>
    %cst_212 = arith.constant dense<0.000000e+00> : vector<8x128xf32>
    %372 = tpu.matmul %330, %371, %cst_212 {dimension_numbers = #tpu.dot_dimension_numbers<[1], [0], [0], [1], [0, 0, 1, 1], [], []>} : vector<8x128xf32>, vector<128x128xf32>, vector<8x128xf32> -> vector<8x128xf32>
    %373 = arith.addf %370, %372 : vector<8x128xf32>
    %cst_213 = arith.constant 5.000000e-01 : f32
    %374 = vector.broadcast %cst_213 : f32 to vector<8x128xf32>
    %375 = arith.mulf %374, %373 : vector<8x128xf32>
    %376 = math.tanh %375 : vector<8x128xf32>
    %cst_214 = arith.constant 5.000000e-01 : f32
    %377 = vector.broadcast %cst_214 : f32 to vector<8x128xf32>
    %378 = arith.mulf %377, %376 : vector<8x128xf32>
    %cst_215 = arith.constant 5.000000e-01 : f32
    %379 = vector.broadcast %cst_215 : f32 to vector<8x128xf32>
    %380 = arith.addf %378, %379 : vector<8x128xf32>
    %381 = arith.mulf %360, %328 : vector<8x128xf32>
    %382 = arith.mulf %347, %367 : vector<8x128xf32>
    %383 = arith.addf %381, %382 : vector<8x128xf32>
    %384 = math.tanh %383 : vector<8x128xf32>
    %385 = arith.mulf %380, %384 : vector<8x128xf32>
    %386 = arith.index_cast %c6_i32 : i32 to index
    %c0_216 = arith.constant 0 : index
    %c0_217 = arith.constant 0 : index
    %387 = vector.load %arg4[%386, %c0_216, %c0_217] : memref<8x8x128xf32, #tpu.memory_space<vmem>>, vector<1x8x128xf32>
    %388 = vector.shape_cast %387 : vector<1x8x128xf32> to vector<8x128xf32>
    %389 = vector.shape_cast %385 : vector<8x128xf32> to vector<1x8x128xf32>
    tpu.vector_store %arg4[%386, %c0_216, %c0_217], %389 {strides = array<i32>} : memref<8x8x128xf32, #tpu.memory_space<vmem>>, vector<1x8x128xf32>,
    %c7_i32 = arith.constant 7 : i32
    %390 = arith.index_cast %c7_i32 : i32 to index
    %c0_218 = arith.constant 0 : index
    %c0_219 = arith.constant 0 : index
    %391 = vector.load %arg2[%390, %c0_218, %c0_219] : memref<8x8x512xf32, #tpu.memory_space<vmem>>, vector<1x8x128xf32>
    %392 = vector.shape_cast %391 : vector<1x8x128xf32> to vector<8x128xf32>
    %c0_220 = arith.constant 0 : index
    %c0_221 = arith.constant 0 : index
    %393 = vector.load %arg7[%c0_220, %c0_221] : memref<128x512xf32, #tpu.memory_space<vmem>>, vector<128x128xf32>
    %cst_222 = arith.constant dense<0.000000e+00> : vector<8x128xf32>
    %394 = tpu.matmul %385, %393, %cst_222 {dimension_numbers = #tpu.dot_dimension_numbers<[1], [0], [0], [1], [0, 0, 1, 1], [], []>} : vector<8x128xf32>, vector<128x128xf32>, vector<8x128xf32> -> vector<8x128xf32>
    %395 = arith.addf %392, %394 : vector<8x128xf32>
    %cst_223 = arith.constant 5.000000e-01 : f32
    %396 = vector.broadcast %cst_223 : f32 to vector<8x128xf32>
    %397 = arith.mulf %396, %395 : vector<8x128xf32>
    %398 = math.tanh %397 : vector<8x128xf32>
    %cst_224 = arith.constant 5.000000e-01 : f32
    %399 = vector.broadcast %cst_224 : f32 to vector<8x128xf32>
    %400 = arith.mulf %399, %398 : vector<8x128xf32>
    %cst_225 = arith.constant 5.000000e-01 : f32
    %401 = vector.broadcast %cst_225 : f32 to vector<8x128xf32>
    %402 = arith.addf %400, %401 : vector<8x128xf32>
    %403 = arith.index_cast %c7_i32 : i32 to index
    %c0_226 = arith.constant 0 : index
    %c128_227 = arith.constant 128 : index
    %404 = vector.load %arg2[%403, %c0_226, %c128_227] : memref<8x8x512xf32, #tpu.memory_space<vmem>>, vector<1x8x128xf32>
    %405 = vector.shape_cast %404 : vector<1x8x128xf32> to vector<8x128xf32>
    %c0_228 = arith.constant 0 : index
    %c128_229 = arith.constant 128 : index
    %406 = vector.load %arg7[%c0_228, %c128_229] : memref<128x512xf32, #tpu.memory_space<vmem>>, vector<128x128xf32>
    %cst_230 = arith.constant dense<0.000000e+00> : vector<8x128xf32>
    %407 = tpu.matmul %385, %406, %cst_230 {dimension_numbers = #tpu.dot_dimension_numbers<[1], [0], [0], [1], [0, 0, 1, 1], [], []>} : vector<8x128xf32>, vector<128x128xf32>, vector<8x128xf32> -> vector<8x128xf32>
    %408 = arith.addf %405, %407 : vector<8x128xf32>
    %cst_231 = arith.constant 5.000000e-01 : f32
    %409 = vector.broadcast %cst_231 : f32 to vector<8x128xf32>
    %410 = arith.mulf %409, %408 : vector<8x128xf32>
    %411 = math.tanh %410 : vector<8x128xf32>
    %cst_232 = arith.constant 5.000000e-01 : f32
    %412 = vector.broadcast %cst_232 : f32 to vector<8x128xf32>
    %413 = arith.mulf %412, %411 : vector<8x128xf32>
    %cst_233 = arith.constant 5.000000e-01 : f32
    %414 = vector.broadcast %cst_233 : f32 to vector<8x128xf32>
    %415 = arith.addf %413, %414 : vector<8x128xf32>
    %416 = arith.index_cast %c7_i32 : i32 to index
    %c0_234 = arith.constant 0 : index
    %c256_235 = arith.constant 256 : index
    %417 = vector.load %arg2[%416, %c0_234, %c256_235] : memref<8x8x512xf32, #tpu.memory_space<vmem>>, vector<1x8x128xf32>
    %418 = vector.shape_cast %417 : vector<1x8x128xf32> to vector<8x128xf32>
    %c0_236 = arith.constant 0 : index
    %c256_237 = arith.constant 256 : index
    %419 = vector.load %arg7[%c0_236, %c256_237] : memref<128x512xf32, #tpu.memory_space<vmem>>, vector<128x128xf32>
    %cst_238 = arith.constant dense<0.000000e+00> : vector<8x128xf32>
    %420 = tpu.matmul %385, %419, %cst_238 {dimension_numbers = #tpu.dot_dimension_numbers<[1], [0], [0], [1], [0, 0, 1, 1], [], []>} : vector<8x128xf32>, vector<128x128xf32>, vector<8x128xf32> -> vector<8x128xf32>
    %421 = arith.addf %418, %420 : vector<8x128xf32>
    %422 = math.tanh %421 : vector<8x128xf32>
    %423 = arith.index_cast %c7_i32 : i32 to index
    %c0_239 = arith.constant 0 : index
    %c384_240 = arith.constant 384 : index
    %424 = vector.load %arg2[%423, %c0_239, %c384_240] : memref<8x8x512xf32, #tpu.memory_space<vmem>>, vector<1x8x128xf32>
    %425 = vector.shape_cast %424 : vector<1x8x128xf32> to vector<8x128xf32>
    %c0_241 = arith.constant 0 : index
    %c384_242 = arith.constant 384 : index
    %426 = vector.load %arg7[%c0_241, %c384_242] : memref<128x512xf32, #tpu.memory_space<vmem>>, vector<128x128xf32>
    %cst_243 = arith.constant dense<0.000000e+00> : vector<8x128xf32>
    %427 = tpu.matmul %385, %426, %cst_243 {dimension_numbers = #tpu.dot_dimension_numbers<[1], [0], [0], [1], [0, 0, 1, 1], [], []>} : vector<8x128xf32>, vector<128x128xf32>, vector<8x128xf32> -> vector<8x128xf32>
    %428 = arith.addf %425, %427 : vector<8x128xf32>
    %cst_244 = arith.constant 5.000000e-01 : f32
    %429 = vector.broadcast %cst_244 : f32 to vector<8x128xf32>
    %430 = arith.mulf %429, %428 : vector<8x128xf32>
    %431 = math.tanh %430 : vector<8x128xf32>
    %cst_245 = arith.constant 5.000000e-01 : f32
    %432 = vector.broadcast %cst_245 : f32 to vector<8x128xf32>
    %433 = arith.mulf %432, %431 : vector<8x128xf32>
    %cst_246 = arith.constant 5.000000e-01 : f32
    %434 = vector.broadcast %cst_246 : f32 to vector<8x128xf32>
    %435 = arith.addf %433, %434 : vector<8x128xf32>
    %436 = arith.mulf %415, %383 : vector<8x128xf32>
    %437 = arith.mulf %402, %422 : vector<8x128xf32>
    %438 = arith.addf %436, %437 : vector<8x128xf32>
    %439 = math.tanh %438 : vector<8x128xf32>
    %440 = arith.mulf %435, %439 : vector<8x128xf32>
    %441 = arith.index_cast %c7_i32 : i32 to index
    %c0_247 = arith.constant 0 : index
    %c0_248 = arith.constant 0 : index
    %442 = vector.load %arg4[%441, %c0_247, %c0_248] : memref<8x8x128xf32, #tpu.memory_space<vmem>>, vector<1x8x128xf32>
    %443 = vector.shape_cast %442 : vector<1x8x128xf32> to vector<8x128xf32>
    %444 = vector.shape_cast %440 : vector<8x128xf32> to vector<1x8x128xf32>
    tpu.vector_store %arg4[%441, %c0_247, %c0_248], %444 {strides = array<i32>} : memref<8x8x128xf32, #tpu.memory_space<vmem>>, vector<1x8x128xf32>,
    %c8_i32 = arith.constant 8 : i32
    %c0_249 = arith.constant 0 : index
    %c0_250 = arith.constant 0 : index
    %445 = vector.load %arg9[%c0_249, %c0_250] : memref<8x128xf32, #tpu.memory_space<vmem>>, vector<8x128xf32>
    tpu.vector_store %arg9[%c0_249, %c0_250], %440 {strides = array<i32>} : memref<8x128xf32, #tpu.memory_space<vmem>>, vector<8x128xf32>,
    %c0_251 = arith.constant 0 : index
    %c0_252 = arith.constant 0 : index
    %446 = vector.load %arg10[%c0_251, %c0_252] : memref<8x128xf32, #tpu.memory_space<vmem>>, vector<8x128xf32>
    tpu.vector_store %arg10[%c0_251, %c0_252], %438 {strides = array<i32>} : memref<8x128xf32, #tpu.memory_space<vmem>>, vector<8x128xf32>,
    %c0_i32_253 = arith.constant 0 : i32
    %447 = arith.cmpi eq, %arg1, %c0_i32_253 : i32
    %448 = arith.extui %447 : i1 to i32
    %c0_i32_254 = arith.constant 0 : i32
    %449 = arith.cmpi ne, %448, %c0_i32_254 : i32
    scf.if %449 {
      %c0_255 = arith.constant 0 : index
      %c0_256 = arith.constant 0 : index
      %450 = vector.load %arg9[%c0_255, %c0_256] : memref<8x128xf32, #tpu.memory_space<vmem>>, vector<8x128xf32>
      %c0_257 = arith.constant 0 : index
      %c0_258 = arith.constant 0 : index
      %451 = vector.load %arg5[%c0_257, %c0_258] : memref<8x128xf32, #tpu.memory_space<vmem>>, vector<8x128xf32>
      tpu.vector_store %arg5[%c0_257, %c0_258], %450 {strides = array<i32>} : memref<8x128xf32, #tpu.memory_space<vmem>>, vector<8x128xf32>,
      %c0_259 = arith.constant 0 : index
      %c0_260 = arith.constant 0 : index
      %452 = vector.load %arg10[%c0_259, %c0_260] : memref<8x128xf32, #tpu.memory_space<vmem>>, vector<8x128xf32>
      %c0_261 = arith.constant 0 : index
      %c0_262 = arith.constant 0 : index
      %453 = vector.load %arg6[%c0_261, %c0_262] : memref<8x128xf32, #tpu.memory_space<vmem>>, vector<8x128xf32>
      tpu.vector_store %arg6[%c0_261, %c0_262], %452 {strides = array<i32>} : memref<8x128xf32, #tpu.memory_space<vmem>>, vector<8x128xf32>,
    } else {
    }
    return
  }
  func.func @transform_0(%arg0: i32, %arg1: i32) -> (i32, i32, i32) {
    %c0_i32 = arith.constant 0 : i32
    %c0_i32_0 = arith.constant 0 : i32
    return %arg1, %arg0, %c0_i32 : i32, i32, i32
  }
  func.func @transform_2(%arg0: i32, %arg1: i32) -> (i32, i32, i32) {
    %c0_i32 = arith.constant 0 : i32
    %c0_i32_0 = arith.constant 0 : i32
    return %arg1, %arg0, %c0_i32 : i32, i32, i32
  }
  func.func @transform_3(%arg0: i32, %arg1: i32) -> (i32, i32) {
    %c0_i32 = arith.constant 0 : i32
    %c0_i32_0 = arith.constant 0 : i32
    return %arg0, %c0_i32 : i32, i32
  }
  func.func @transform_4(%arg0: i32, %arg1: i32) -> (i32, i32) {
    %c0_i32 = arith.constant 0 : i32
    %c0_i32_0 = arith.constant 0 : i32
    return %arg0, %c0_i32 : i32, i32
  }
}

</mosaic_0001>

<bundles_post_ra>
// kernel: tpu_custom_call.1
= control target key start
LH: loop header
LB: loop body
LE: loop exit
PB: predicated region body
PF: predicated region fallthrough
CT: control target
= control target key end

     0   :  { %10 = vsyncpa [#allocation7], 0  ;;  %s2555_s0 = inlined_call_operand.hbm [shape: f32[8,8,512], index: 0, kind: input, shape index: {}]   ;;  %s2556_s1 = inlined_call_operand.hbm [shape: f32[128,512], index: 1, kind: input, shape index: {}]   ;;  %s2557_s2 = inlined_call_operand.hbm [shape: f32[8,8,128], index: 2, kind: output, shape index: {0}]   ;;  %s2558_s3 = inlined_call_operand.hbm [shape: f32[8,128], index: 3, kind: output, shape index: {1}]   ;;  %s2559_s4 = inlined_call_operand.hbm [shape: f32[8,128], index: 4, kind: output, shape index: {2}]  }
   0x1   :  { %11 = vsyncpa [#allocation8], 0 }
   0x2   :  { %12 = vsyncpa [#allocation11], 0  ;;  %s17_s17 = sshll.u32 %s2555_s0, 4  ;;  %s1721_s18 = smov [#allocation6]   ;;  %s18_s17 = int_to_ptr.hbm [resolvable:$true] %s17_s17 }
   0x3   :  { %s19_s19 = sshll.u32 %s1721_s18, 4  ;;  %s1722_s20 = smov 512   ;;  %s20_s19 = int_to_ptr.vmem [resolvable:$true] %s19_s19 }
   0x4   :  { %s1723_s21 = smov 32  }
   0x5   :  { %25 = dma.hbm_to_vmem [thread:$0]  %s18_s17, 4096, %s20_s19, [#allocation7], %s1722_s20, %s1722_s20, %s1723_s21  }
   0x6   :  { %1713 = dma.done.wait [#allocation7], 4096  }
   0x7   :  { %1714 = vsyncadd [#allocation7], 4294963200  ;;  %s41_s24 = sshll.u32 %s2556_s1, 4  ;;  %s1724_s25 = smov [#allocation2]   ;;  %s42_s24 = int_to_ptr.hbm [resolvable:$true] %s41_s24 }
   0x8   :  { %s43_s26 = sshll.u32 %s1724_s25, 4  ;;  %s44_s26 = int_to_ptr.vmem [resolvable:$true] %s43_s26 }
   0x9   :  { %46 = dma.hbm_to_vmem [thread:$0]  %s42_s24, 8192, %s44_s26, [#allocation3] }
   0xa   :  { %1715 = dma.done.wait [#allocation3], 8192 }
   0xb   :  { %1716 = vsyncadd [#allocation3], 4294959104  ;;  %v1762_v0 = vld [vmem:[#allocation2 + $0x1e0] sm:$0xff]  ;;  %v1764_v1 = vld [vmem:[#allocation2 + $0x1e8] sm:$0xff]  ;;  %v1725_v63 = vmov 0.0   ;;  %s1726_s0 = smov [#allocation9]  }
   0xc   :  { %v1766_v2 = vld [vmem:[#allocation2 + $0x1f0] sm:$0xff]  ;;  %72 = vmatpush.msra.mxu0 %v1762_v0  ;;  %114 = vmatpush.msra.mxu1 %v1764_v1  ;;  %v1770_v3 = vld [vmem:[#allocation2 + $0x1c0] sm:$0xff]  ;;  %v1772_v4 = vld [vmem:[#allocation2 + $0x1c8] sm:$0xff]  ;;  %s1450_s1 = sshll.u32 %s1726_s0, 4  ;;  %s1452_s29 = sshll.u32 %s2557_s2, 4  ;;  %s1451_s1 = int_to_ptr.vmem [resolvable:$true] %s1450_s1  ;;  %s1453_s29 = int_to_ptr.hbm [resolvable:$true] %s1452_s29 }
   0xd   :  { %v1774_v5 = vld [vmem:[#allocation2 + $0x1d0] sm:$0xff]  ;;  %156 = vmatpush.msra.mxu2 %v1766_v2  ;;  %v1777_v6 = vld [vmem:[#allocation2 + $0x1a0] sm:$0xff]  ;;  %v1779_v7 = vld [vmem:[#allocation2 + $0x1a8] sm:$0xff]  ;;  %s1727_s30 = smov [#allocation10]   ;;  %s1466_s8 = sshll.u32 %s2558_s3, 4  ;;  %s1467_s8 = int_to_ptr.hbm [resolvable:$true] %s1466_s8 }
   0xe   :  { %73 = vmatpush.msra.mxu0 %v1770_v3  ;;  %115 = vmatpush.msra.mxu1 %v1772_v4  ;;  %v1783_v8 = vld [vmem:[#allocation2 + $0x1b0] sm:$0xff]  ;;  %v1785_v9 = vld [vmem:[#allocation2 + $0x1f8] sm:$0xff]  ;;  %v1789_v10 = vld [vmem:[#allocation2 + $0x180] sm:$0xff]  ;;  %s1464_s5 = sshll.u32 %s1727_s30, 4  ;;  %s1728_s9 = smov [#allocation12]   ;;  %s1465_s5 = int_to_ptr.vmem [resolvable:$true] %s1464_s5 }
   0xf   :  { %157 = vmatpush.msra.mxu2 %v1774_v5  ;;  %195 = vmatpush.msra.mxu3 %v1785_v9  ;;  %v1791_v11 = vld [vmem:[#allocation2 + $0x188] sm:$0xff]  ;;  %v1793_v12 = vld [vmem:[#allocation2 + $0x1d8] sm:$0xff]  ;;  %v1797_v13 = vld [vmem:[#allocation2 + $0x190] sm:$0xff]  ;;  %s1475_s10 = sshll.u32 %s1728_s9, 4  ;;  %s1477_s13 = sshll.u32 %s2559_s4, 4  ;;  %s1476_s10 = int_to_ptr.vmem [resolvable:$true] %s1475_s10  ;;  %s1478_s13 = int_to_ptr.hbm [resolvable:$true] %s1477_s13 }
  0x10   :  { %74 = vmatpush.msra.mxu0 %v1777_v6  ;;  %116 = vmatpush.msra.mxu1 %v1779_v7  ;;  %v1799_v14 = vld [vmem:[#allocation2 + $0x1b8] sm:$0xff]  ;;  %v1803_v15 = vld [vmem:[#allocation2 + $0x160] sm:$0xff]  ;;  %v1805_v16 = vld [vmem:[#allocation2 + $0x168] sm:$0xff]  ;;  %s1729_s2 = smov 128   ;;  %s1730_s14 = smov 8  }
  0x11   :  { %158 = vmatpush.msra.mxu2 %v1783_v8  ;;  %196 = vmatpush.msra.mxu3 %v1793_v12  ;;  %v1809_v17 = vld [vmem:[#allocation2 + $0x170] sm:$0xff]  ;;  %v1811_v18 = vld [vmem:[#allocation2 + $0x198] sm:$0xff]  ;;  %v1815_v19 = vld [vmem:[#allocation2 + $0x140] sm:$0xff] }
  0x12   :  { %75 = vmatpush.msra.mxu0 %v1789_v10  ;;  %117 = vmatpush.msra.mxu1 %v1791_v11  ;;  %v1817_v20 = vld [vmem:[#allocation2 + $0x148] sm:$0xff]  ;;  %v1821_v21 = vld [vmem:[#allocation2 + $0x150] sm:$0xff]  ;;  %v1823_v22 = vld [vmem:[#allocation2 + $0x178] sm:$0xff] }
  0x13   :  { %159 = vmatpush.msra.mxu2 %v1797_v13  ;;  %197 = vmatpush.msra.mxu3 %v1799_v14  ;;  %v1827_v23 = vld [vmem:[#allocation2 + $0x120] sm:$0xff]  ;;  %v1829_v24 = vld [vmem:[#allocation2 + $0x128] sm:$0xff]  ;;  %v1833_v25 = vld [vmem:[#allocation2 + $0x130] sm:$0xff] }
  0x14   :  { %76 = vmatpush.msra.mxu0 %v1803_v15  ;;  %118 = vmatpush.msra.mxu1 %v1805_v16  ;;  %v1835_v26 = vld [vmem:[#allocation2 + $0x158] sm:$0xff]  ;;  %v1839_v27 = vld [vmem:[#allocation2 + $0x100] sm:$0xff]  ;;  %v1841_v28 = vld [vmem:[#allocation2 + $0x108] sm:$0xff] }
  0x15   :  { %160 = vmatpush.msra.mxu2 %v1809_v17  ;;  %198 = vmatpush.msra.mxu3 %v1811_v18  ;;  %v1845_v29 = vld [vmem:[#allocation2 + $0x110] sm:$0xff]  ;;  %v1847_v30 = vld [vmem:[#allocation2 + $0x138] sm:$0xff]  ;;  %v1851_v31 = vld [vmem:[#allocation2 + $0xe0] sm:$0xff] }
  0x16   :  { %77 = vmatpush.msra.mxu0 %v1815_v19  ;;  %119 = vmatpush.msra.mxu1 %v1817_v20  ;;  %v1853_v32 = vld [vmem:[#allocation2 + $0xe8] sm:$0xff]  ;;  %v1857_v33 = vld [vmem:[#allocation2 + $0xf0] sm:$0xff]  ;;  %v1859_v34 = vld [vmem:[#allocation2 + $0x118] sm:$0xff] }
  0x17   :  { %161 = vmatpush.msra.mxu2 %v1821_v21  ;;  %199 = vmatpush.msra.mxu3 %v1823_v22  ;;  %v1863_v35 = vld [vmem:[#allocation2 + $0xc0] sm:$0xff]  ;;  %v1865_v36 = vld [vmem:[#allocation2 + $0xc8] sm:$0xff]  ;;  %v1869_v37 = vld [vmem:[#allocation2 + $0xd0] sm:$0xff] }
  0x18   :  { %78 = vmatpush.msra.mxu0 %v1827_v23  ;;  %120 = vmatpush.msra.mxu1 %v1829_v24  ;;  %v1871_v38 = vld [vmem:[#allocation2 + $0xf8] sm:$0xff]  ;;  %v1875_v39 = vld [vmem:[#allocation2 + $0xa0] sm:$0xff]  ;;  %v1877_v40 = vld [vmem:[#allocation2 + $0xa8] sm:$0xff] }
  0x19   :  { %162 = vmatpush.msra.mxu2 %v1833_v25  ;;  %200 = vmatpush.msra.mxu3 %v1835_v26  ;;  %v1881_v41 = vld [vmem:[#allocation2 + $0xb0] sm:$0xff]  ;;  %v1883_v42 = vld [vmem:[#allocation2 + $0xd8] sm:$0xff]  ;;  %v1887_v43 = vld [vmem:[#allocation2 + $0x80] sm:$0xff] }
  0x1a   :  { %79 = vmatpush.msra.mxu0 %v1839_v27  ;;  %121 = vmatpush.msra.mxu1 %v1841_v28  ;;  %2622 = vst [vmem:[#allocation21_spill] sm:$0xff] %v1887_v43  ;;  %v1889_v44 = vld [vmem:[#allocation2 + $0x88] sm:$0xff]  ;;  %v1893_v45 = vld [vmem:[#allocation2 + $0x90] sm:$0xff]  ;;  %v1895_v46 = vld [vmem:[#allocation2 + $0xb8] sm:$0xff] }
  0x1b   :  { %163 = vmatpush.msra.mxu2 %v1845_v29  ;;  %201 = vmatpush.msra.mxu3 %v1847_v30  ;;  %2623 = vst [vmem:[#allocation22_spill] sm:$0xff] %v1889_v44  ;;  %v1899_v47 = vld [vmem:[#allocation2 + $0x60] sm:$0xff]  ;;  %v1901_v48 = vld [vmem:[#allocation2 + $0x68] sm:$0xff]  ;;  %v1905_v49 = vld [vmem:[#allocation2 + $0x70] sm:$0xff] }
  0x1c   :  { %80 = vmatpush.msra.mxu0 %v1851_v31  ;;  %122 = vmatpush.msra.mxu1 %v1853_v32  ;;  %2624 = vst [vmem:[#allocation23_spill] sm:$0xff] %v1893_v45  ;;  %v1907_v50 = vld [vmem:[#allocation2 + $0x98] sm:$0xff]  ;;  %v1911_v51 = vld [vmem:[#allocation2 + $0x40] sm:$0xff]  ;;  %v1913_v52 = vld [vmem:[#allocation2 + $0x48] sm:$0xff] }
  0x1d   :  { %164 = vmatpush.msra.mxu2 %v1857_v33  ;;  %202 = vmatpush.msra.mxu3 %v1859_v34  ;;  %2625 = vst [vmem:[#allocation24_spill] sm:$0xff] %v1899_v47  ;;  %v1917_v53 = vld [vmem:[#allocation2 + $0x50] sm:$0xff]  ;;  %v1919_v54 = vld [vmem:[#allocation2 + $0x78] sm:$0xff]  ;;  %v1923_v55 = vld [vmem:[#allocation2 + $0x20] sm:$0xff] }
  0x1e   :  { %81 = vmatpush.msra.mxu0 %v1863_v35  ;;  %123 = vmatpush.msra.mxu1 %v1865_v36  ;;  %2626 = vst [vmem:[#allocation25_spill] sm:$0xff] %v1901_v48  ;;  %v1925_v56 = vld [vmem:[#allocation2 + $0x28] sm:$0xff]  ;;  %v1929_v57 = vld [vmem:[#allocation2 + $0x30] sm:$0xff]  ;;  %v1931_v58 = vld [vmem:[#allocation2 + $0x58] sm:$0xff] }
  0x1f   :  { %165 = vmatpush.msra.mxu2 %v1869_v37  ;;  %203 = vmatpush.msra.mxu3 %v1871_v38  ;;  %2627 = vst [vmem:[#allocation26_spill] sm:$0xff] %v1905_v49  ;;  %v1935_v59 = vld [vmem:[#allocation2] sm:$0xff]  ;;  %v1937_v60 = vld [vmem:[#allocation2 + $0x8] sm:$0xff]  ;;  %v1941_v61 = vld [vmem:[#allocation2 + $0x10] sm:$0xff] }
  0x20   :  { %82 = vmatpush.msra.mxu0 %v1875_v39  ;;  %124 = vmatpush.msra.mxu1 %v1877_v40  ;;  %2628 = vst [vmem:[#allocation27_spill] sm:$0xff] %v1907_v50  ;;  %v1947_v62 = vld [vmem:[#allocation2 + $0x38] sm:$0xff] }
  0x21   :  { %166 = vmatpush.msra.mxu2 %v1881_v41  ;;  %204 = vmatpush.msra.mxu3 %v1883_v42  ;;  %2629 = vst [vmem:[#allocation28_spill] sm:$0xff] %v1911_v51 }
  0x22   :  { %83 = vmatpush.msra.mxu0 %v1887_v43  ;;  %125 = vmatpush.msra.mxu1 %v1889_v44  ;;  %2630 = vst [vmem:[#allocation29_spill] sm:$0xff] %v1913_v52 }
  0x23   :  { %167 = vmatpush.msra.mxu2 %v1893_v45  ;;  %205 = vmatpush.msra.mxu3 %v1895_v46  ;;  %2631 = vst [vmem:[#allocation30_spill] sm:$0xff] %v1917_v53 }
  0x24   :  { %84 = vmatpush.msra.mxu0 %v1899_v47  ;;  %126 = vmatpush.msra.mxu1 %v1901_v48  ;;  %2632 = vst [vmem:[#allocation31_spill] sm:$0xff] %v1919_v54 }
  0x25   :  { %168 = vmatpush.msra.mxu2 %v1905_v49  ;;  %206 = vmatpush.msra.mxu3 %v1907_v50  ;;  %2633 = vst [vmem:[#allocation32_spill] sm:$0xff] %v1923_v55 }
  0x26   :  { %2634 = vst [vmem:[#allocation33_spill] sm:$0xff] %v1925_v56  ;;  %85 = vmatpush.msra.mxu0 %v1911_v51  ;;  %127 = vmatpush.msra.mxu1 %v1913_v52 }
  0x27   :  { %2635 = vst [vmem:[#allocation34_spill] sm:$0xff] %v1929_v57  ;;  %169 = vmatpush.msra.mxu2 %v1917_v53  ;;  %207 = vmatpush.msra.mxu3 %v1919_v54 }
  0x28   :  { %2636 = vst [vmem:[#allocation35_spill] sm:$0xff] %v1931_v58  ;;  %86 = vmatpush.msra.mxu0 %v1923_v55  ;;  %128 = vmatpush.msra.mxu1 %v1925_v56  ;;  %v1950_v55 = vld [vmem:[#allocation2 + $0x18] sm:$0xff] }
  0x29   :  { %2637 = vst [vmem:[#allocation36_spill] sm:$0xff] %v1935_v59  ;;  %170 = vmatpush.msra.mxu2 %v1929_v57  ;;  %208 = vmatpush.msra.mxu3 %v1931_v58 }
  0x2a   :  { %2638 = vst [vmem:[#allocation37_spill] sm:$0xff] %v1937_v60  ;;  %87 = vmatpush.msra.mxu0 %v1935_v59  ;;  %129 = vmatpush.msra.mxu1 %v1937_v60 }
  0x2b   :  { %2639 = vst [vmem:[#allocation38_spill] sm:$0xff] %v1941_v61  ;;  %171 = vmatpush.msra.mxu2 %v1941_v61  ;;  %88 = vmatmul.f32.vlgmr.msra.gmra.mxu0 %v1725_v63 }
  0x2c   :  { %2640 = vst [vmem:[#allocation39_spill] sm:$0xff] %v1947_v62  ;;  %130 = vmatmul.f32.vlgmr.msra.gmra.mxu1 %v1725_v63  ;;  %172 = vmatmul.f32.vlgmr.msra.gmra.mxu2 %v1725_v63 }
  0x2d   :  { %2641 = vst [vmem:[#allocation40_spill] sm:$0xff] %v1950_v55  ;;  %209 = vmatpush.msra.mxu3 %v1947_v62  ;;  %244 = vmatpush.msrb.mxu0 %v1762_v0 }
  0x2e   :  { %286 = vmatpush.msrb.mxu1 %v1764_v1  ;;  %328 = vmatpush.msrb.mxu2 %v1766_v2 }
  0x2f   :  { %210 = vmatpush.msra.mxu3 %v1950_v55  ;;  %245 = vmatpush.msrb.mxu0 %v1770_v3 }
  0x30   :  { %211 = vmatmul.f32.vlgmr.msra.gmra.mxu3 %v1725_v63  ;;  %287 = vmatpush.msrb.mxu1 %v1772_v4  ;;  %v2642_v63 = vld [vmem:[#allocation32_spill] sm:$0xff] }
  0x31   :  { %367 = vmatpush.msrb.mxu3 %v1785_v9  ;;  %329 = vmatpush.msrb.mxu2 %v1774_v5 }
  0x32   :  { %246 = vmatpush.msrb.mxu0 %v1777_v6  ;;  %288 = vmatpush.msrb.mxu1 %v1779_v7 }
  0x33   :  { %368 = vmatpush.msrb.mxu3 %v1793_v12  ;;  %330 = vmatpush.msrb.mxu2 %v1783_v8 }
  0x34   :  { %247 = vmatpush.msrb.mxu0 %v1789_v10  ;;  %289 = vmatpush.msrb.mxu1 %v1791_v11 }
  0x35   :  { %369 = vmatpush.msrb.mxu3 %v1799_v14  ;;  %331 = vmatpush.msrb.mxu2 %v1797_v13 }
  0x36   :  { %248 = vmatpush.msrb.mxu0 %v1803_v15  ;;  %290 = vmatpush.msrb.mxu1 %v1805_v16 }
  0x37   :  { %370 = vmatpush.msrb.mxu3 %v1811_v18  ;;  %332 = vmatpush.msrb.mxu2 %v1809_v17 }
  0x38   :  { %249 = vmatpush.msrb.mxu0 %v1815_v19  ;;  %291 = vmatpush.msrb.mxu1 %v1817_v20 }
  0x39   :  { %371 = vmatpush.msrb.mxu3 %v1823_v22  ;;  %333 = vmatpush.msrb.mxu2 %v1821_v21 }
  0x3a   :  { %250 = vmatpush.msrb.mxu0 %v1827_v23  ;;  %292 = vmatpush.msrb.mxu1 %v1829_v24 }
  0x3b   :  { %372 = vmatpush.msrb.mxu3 %v1835_v26  ;;  %334 = vmatpush.msrb.mxu2 %v1833_v25 }
  0x3c   :  { %251 = vmatpush.msrb.mxu0 %v1839_v27  ;;  %293 = vmatpush.msrb.mxu1 %v1841_v28 }
  0x3d   :  { %373 = vmatpush.msrb.mxu3 %v1847_v30  ;;  %335 = vmatpush.msrb.mxu2 %v1845_v29 }
  0x3e   :  { %252 = vmatpush.msrb.mxu0 %v1851_v31  ;;  %294 = vmatpush.msrb.mxu1 %v1853_v32 }
  0x3f   :  { %374 = vmatpush.msrb.mxu3 %v1859_v34  ;;  %336 = vmatpush.msrb.mxu2 %v1857_v33 }
  0x40   :  { %253 = vmatpush.msrb.mxu0 %v1863_v35  ;;  %295 = vmatpush.msrb.mxu1 %v1865_v36 }
  0x41   :  { %375 = vmatpush.msrb.mxu3 %v1871_v38  ;;  %337 = vmatpush.msrb.mxu2 %v1869_v37 }
  0x42   :  { %254 = vmatpush.msrb.mxu0 %v1875_v39  ;;  %296 = vmatpush.msrb.mxu1 %v1877_v40 }
  0x43   :  { %376 = vmatpush.msrb.mxu3 %v1883_v42  ;;  %338 = vmatpush.msrb.mxu2 %v1881_v41 }
  0x44   :  { %255 = vmatpush.msrb.mxu0 %v1887_v43  ;;  %297 = vmatpush.msrb.mxu1 %v1889_v44 }
  0x45   :  { %377 = vmatpush.msrb.mxu3 %v1895_v46  ;;  %339 = vmatpush.msrb.mxu2 %v1893_v45 }
  0x46   :  { %256 = vmatpush.msrb.mxu0 %v1899_v47  ;;  %298 = vmatpush.msrb.mxu1 %v1901_v48 }
  0x47   :  { %378 = vmatpush.msrb.mxu3 %v1907_v50  ;;  %340 = vmatpush.msrb.mxu2 %v1905_v49 }
  0x48   :  { %257 = vmatpush.msrb.mxu0 %v1911_v51  ;;  %299 = vmatpush.msrb.mxu1 %v1913_v52 }
  0x49   :  { %379 = vmatpush.msrb.mxu3 %v1919_v54  ;;  %341 = vmatpush.msrb.mxu2 %v1917_v53 }
  0x4a   :  { %258 = vmatpush.msrb.mxu0 %v2642_v63  ;;  %300 = vmatpush.msrb.mxu1 %v1925_v56 }
  0x4b   :  { %380 = vmatpush.msrb.mxu3 %v1931_v58  ;;  %342 = vmatpush.msrb.mxu2 %v1929_v57 }
  0x4c   :  { %259 = vmatpush.msrb.mxu0 %v1935_v59  ;;  %301 = vmatpush.msrb.mxu1 %v1937_v60 }
  0x4d   :  { %381 = vmatpush.msrb.mxu3 %v1947_v62  ;;  %343 = vmatpush.msrb.mxu2 %v1941_v61 }
  0x4e   :  { %417 = vmatpush.msra.mxu0 %v1762_v0  ;;  %459 = vmatpush.msra.mxu1 %v1764_v1 }
  0x4f   :  { %382 = vmatpush.msrb.mxu3 %v1950_v55  ;;  %501 = vmatpush.msra.mxu2 %v1766_v2 }
  0x50   :  { %418 = vmatpush.msra.mxu0 %v1770_v3  ;;  %460 = vmatpush.msra.mxu1 %v1772_v4 }
  0x51   :  { %540 = vmatpush.msra.mxu3 %v1785_v9  ;;  %502 = vmatpush.msra.mxu2 %v1774_v5 }
  0x52   :  { %419 = vmatpush.msra.mxu0 %v1777_v6  ;;  %461 = vmatpush.msra.mxu1 %v1779_v7 }
  0x53   :  { %541 = vmatpush.msra.mxu3 %v1793_v12  ;;  %503 = vmatpush.msra.mxu2 %v1783_v8 }
  0x54   :  { %420 = vmatpush.msra.mxu0 %v1789_v10  ;;  %462 = vmatpush.msra.mxu1 %v1791_v11 }
  0x55   :  { %542 = vmatpush.msra.mxu3 %v1799_v14  ;;  %504 = vmatpush.msra.mxu2 %v1797_v13 }
  0x56   :  { %421 = vmatpush.msra.mxu0 %v1803_v15  ;;  %463 = vmatpush.msra.mxu1 %v1805_v16 }
  0x57   :  { %543 = vmatpush.msra.mxu3 %v1811_v18  ;;  %505 = vmatpush.msra.mxu2 %v1809_v17 }
  0x58   :  { %422 = vmatpush.msra.mxu0 %v1815_v19  ;;  %464 = vmatpush.msra.mxu1 %v1817_v20 }
  0x59   :  { %544 = vmatpush.msra.mxu3 %v1823_v22  ;;  %506 = vmatpush.msra.mxu2 %v1821_v21 }
  0x5a   :  { %423 = vmatpush.msra.mxu0 %v1827_v23  ;;  %465 = vmatpush.msra.mxu1 %v1829_v24 }
  0x5b   :  { %545 = vmatpush.msra.mxu3 %v1835_v26  ;;  %507 = vmatpush.msra.mxu2 %v1833_v25 }
  0x5c   :  { %424 = vmatpush.msra.mxu0 %v1839_v27  ;;  %466 = vmatpush.msra.mxu1 %v1841_v28 }
  0x5d   :  { %546 = vmatpush.msra.mxu3 %v1847_v30  ;;  %508 = vmatpush.msra.mxu2 %v1845_v29 }
  0x5e   :  { %425 = vmatpush.msra.mxu0 %v1851_v31  ;;  %467 = vmatpush.msra.mxu1 %v1853_v32 }
  0x5f   :  { %547 = vmatpush.msra.mxu3 %v1859_v34  ;;  %509 = vmatpush.msra.mxu2 %v1857_v33 }
  0x60   :  { %426 = vmatpush.msra.mxu0 %v1863_v35  ;;  %468 = vmatpush.msra.mxu1 %v1865_v36 }
  0x61   :  { %548 = vmatpush.msra.mxu3 %v1871_v38  ;;  %510 = vmatpush.msra.mxu2 %v1869_v37 }
  0x62   :  { %427 = vmatpush.msra.mxu0 %v1875_v39  ;;  %469 = vmatpush.msra.mxu1 %v1877_v40 }
  0x63   :  { %549 = vmatpush.msra.mxu3 %v1883_v42  ;;  %511 = vmatpush.msra.mxu2 %v1881_v41 }
  0x64   :  { %428 = vmatpush.msra.mxu0 %v1887_v43  ;;  %470 = vmatpush.msra.mxu1 %v1889_v44 }
  0x65   :  { %550 = vmatpush.msra.mxu3 %v1895_v46  ;;  %512 = vmatpush.msra.mxu2 %v1893_v45 }
  0x66   :  { %429 = vmatpush.msra.mxu0 %v1899_v47  ;;  %471 = vmatpush.msra.mxu1 %v1901_v48 }
  0x67   :  { %551 = vmatpush.msra.mxu3 %v1907_v50  ;;  %513 = vmatpush.msra.mxu2 %v1905_v49 }
  0x68   :  { %430 = vmatpush.msra.mxu0 %v1911_v51  ;;  %472 = vmatpush.msra.mxu1 %v1913_v52  ;;  %v55_v52 = vld [vmem:[#allocation6] sm:$0xff] }
  0x69   :  { %552 = vmatpush.msra.mxu3 %v1919_v54  ;;  %514 = vmatpush.msra.mxu2 %v1917_v53  ;;  %v97_v53 = vld [vmem:[#allocation6 + $0x8] sm:$0xff] }
  0x6a   :  { %431 = vmatpush.msra.mxu0 %v2642_v63  ;;  %473 = vmatpush.msra.mxu1 %v1925_v56 }
  0x6b   :  { %553 = vmatpush.msra.mxu3 %v1931_v58  ;;  %515 = vmatpush.msra.mxu2 %v1929_v57  ;;  %v139_v57 = vld [vmem:[#allocation6 + $0x10] sm:$0xff] }
  0x6c   :  { %432 = vmatpush.msra.mxu0 %v1935_v59  ;;  %474 = vmatpush.msra.mxu1 %v1937_v60  ;;  %v178_v59 = vld [vmem:[#allocation6 + $0x18] sm:$0xff] }
  0x6d   :  { %554 = vmatpush.msra.mxu3 %v1947_v62  ;;  %516 = vmatpush.msra.mxu2 %v1941_v61 }
  0x6f   :  { %555 = vmatpush.msra.mxu3 %v1950_v55 }
  0xa8   :  { %v89_v51 = vpop.f32.mrf.mxu0 }
  0xa9   :  { %v92_v58 = vadd.f32 %v89_v51, %v55_v52  ;;  %v131_v54 = vpop.f32.mrf.mxu1 }
  0xaa   :  { %v134_v63 = vadd.f32 %v131_v54, %v97_v53 }
  0xab   :  { %v93_v49 = vmul.f32 0.5, %v92_v58 }
  0xac   :  { %v135_v56 = vmul.f32 0.5, %v134_v63  ;;  %v2152_v63 = vld [vmem:[#allocation2 + $0x1e8] sm:$0xff] }
  0xad   :  { %1513 = vtanh.f32 %v93_v49 }
  0xae   :  { %1515 = vtanh.f32 %v135_v56 }
  0xaf   :  { %v173_v62 = vpop.f32.mrf.mxu2 }
  0xb0   :  { %v176_v48 = vadd.f32 %v173_v62, %v139_v57 }
  0xb2   :  { %1517 = vtanh.f32 %v176_v48 }
  0xb3   :  { %v1514_v60 = vpop.eup %1513  ;;  %v212_v47 = vpop.f32.mrf.mxu3 }
  0xb4   :  { %v1516_v61 = vpop.eup %1515  ;;  %v95_v50 = vmul.f32 0.5, %v1514_v60  ;;  %v215_v55 = vadd.f32 %v212_v47, %v178_v59  ;;  %v400_v59 = vld [vmem:[#allocation6 + $0x40] sm:$0xff]  ;;  %v442_v60 = vld [vmem:[#allocation6 + $0x48] sm:$0xff] }
  0xb5   :  { %v137_v45 = vmul.f32 0.5, %v1516_v61  ;;  %v2150_v61 = vld [vmem:[#allocation2 + $0x1e0] sm:$0xff] }
  0xb6   :  { %v96_v44 = vadd.f32 0.5, %v95_v50  ;;  %v216_v43 = vmul.f32 0.5, %v215_v55 }
  0xb7   :  { %v138_v51 = vadd.f32 0.5, %v137_v45 }
  0xb8   :  { %v1518_v52 = vpop.eup %1517  ;;  %1519 = vtanh.f32 %v216_v43 }
  0xb9   :  { %v220_v53 = vmul.f32 0.0, %v138_v51  ;;  %v221_v54 = vmul.f32 %v1518_v52, %v96_v44  ;;  %v2154_v51 = vld [vmem:[#allocation2 + $0x1f0] sm:$0xff] }
  0xbb   :  { %v2082_v49 = vadd.f32 %v221_v54, %v220_v53  ;;  %v2158_v54 = vld [vmem:[#allocation2 + $0x1f8] sm:$0xff] }
  0xbd   :  { %1521 = vtanh.f32 %v2082_v49 }
  0xbe   :  { %v1520_v56 = vpop.eup %1519 }
  0xbf   :  { %v218_v57 = vmul.f32 0.5, %v1520_v56 }
  0xc1   :  { %v219_v48 = vadd.f32 0.5, %v218_v57 }
  0xc3   :  { %v1522_v58 = vpop.eup %1521 }
  0xc4   :  { %v224_v62 = vmul.f32 %v1522_v58, %v219_v48  ;;  %v484_v58 = vld [vmem:[#allocation6 + $0x50] sm:$0xff] }
  0xc6   :  { %225 = vst [vmem:[#allocation9] sm:$0xff] %v224_v62  ;;  %260 = vmatmul.f32.vlgmr.msrb.gmra.mxu0 %v224_v62  ;;  %302 = vmatmul.f32.vlgmr.msrb.gmra.mxu1 %v224_v62 }
  0xc7   :  { %344 = vmatmul.f32.vlgmr.msrb.gmra.mxu2 %v224_v62  ;;  %383 = vmatmul.f32.vlgmr.msrb.gmra.mxu3 %v224_v62  ;;  %v523_v62 = vld [vmem:[#allocation6 + $0x58] sm:$0xff] }
  0xc8   :  { %590 = vmatpush.msrb.mxu0 %v1762_v0  ;;  %632 = vmatpush.msrb.mxu1 %v1764_v1  ;;  %v2643_v0 = vld [vmem:[#allocation21_spill] sm:$0xff]  ;;  %v2644_v1 = vld [vmem:[#allocation22_spill] sm:$0xff] }
  0xc9   :  { %674 = vmatpush.msrb.mxu2 %v1766_v2  ;;  %713 = vmatpush.msrb.mxu3 %v1785_v9  ;;  %v2645_v2 = vld [vmem:[#allocation23_spill] sm:$0xff]  ;;  %v2652_v9 = vld [vmem:[#allocation29_spill] sm:$0xff]  ;;  %2663 = vst [vmem:[#allocation21_spill] sm:$0xff] %v2150_v61 }
  0xca   :  { %591 = vmatpush.msrb.mxu0 %v1770_v3  ;;  %633 = vmatpush.msrb.mxu1 %v1772_v4  ;;  %v2646_v3 = vld [vmem:[#allocation27_spill] sm:$0xff]  ;;  %v2647_v4 = vld [vmem:[#allocation24_spill] sm:$0xff] }
  0xcb   :  { %675 = vmatpush.msrb.mxu2 %v1774_v5  ;;  %714 = vmatpush.msrb.mxu3 %v1793_v12  ;;  %v2648_v5 = vld [vmem:[#allocation25_spill] sm:$0xff]  ;;  %v2655_v12 = vld [vmem:[#allocation32_spill] sm:$0xff] }
  0xcc   :  { %592 = vmatpush.msrb.mxu0 %v1777_v6  ;;  %634 = vmatpush.msrb.mxu1 %v1779_v7  ;;  %v2649_v6 = vld [vmem:[#allocation26_spill] sm:$0xff]  ;;  %v2650_v7 = vld [vmem:[#allocation31_spill] sm:$0xff] }
  0xcd   :  { %676 = vmatpush.msrb.mxu2 %v1783_v8  ;;  %715 = vmatpush.msrb.mxu3 %v1799_v14  ;;  %v2651_v8 = vld [vmem:[#allocation28_spill] sm:$0xff]  ;;  %v2657_v14 = vld [vmem:[#allocation34_spill] sm:$0xff] }
  0xce   :  { %593 = vmatpush.msrb.mxu0 %v1789_v10  ;;  %635 = vmatpush.msrb.mxu1 %v1791_v11  ;;  %v2653_v10 = vld [vmem:[#allocation30_spill] sm:$0xff]  ;;  %v2654_v11 = vld [vmem:[#allocation35_spill] sm:$0xff] }
  0xcf   :  { %677 = vmatpush.msrb.mxu2 %v1797_v13  ;;  %716 = vmatpush.msrb.mxu3 %v1811_v18  ;;  %v2656_v13 = vld [vmem:[#allocation33_spill] sm:$0xff]  ;;  %v2661_v18 = vld [vmem:[#allocation38_spill] sm:$0xff] }
  0xd0   :  { %594 = vmatpush.msrb.mxu0 %v1803_v15  ;;  %636 = vmatpush.msrb.mxu1 %v1805_v16  ;;  %v2658_v15 = vld [vmem:[#allocation39_spill] sm:$0xff]  ;;  %v2659_v16 = vld [vmem:[#allocation36_spill] sm:$0xff] }
  0xd1   :  { %678 = vmatpush.msrb.mxu2 %v1809_v17  ;;  %717 = vmatpush.msrb.mxu3 %v1823_v22  ;;  %v2660_v17 = vld [vmem:[#allocation37_spill] sm:$0xff] }
  0xd2   :  { %595 = vmatpush.msrb.mxu0 %v1815_v19  ;;  %637 = vmatpush.msrb.mxu1 %v1817_v20  ;;  %v2662_v19 = vld [vmem:[#allocation40_spill] sm:$0xff]  ;;  %v227_v20 = vld [vmem:[#allocation6 + $0x20] sm:$0xff] }
  0xd3   :  { %679 = vmatpush.msrb.mxu2 %v1821_v21  ;;  %718 = vmatpush.msrb.mxu3 %v1835_v26  ;;  %v269_v21 = vld [vmem:[#allocation6 + $0x28] sm:$0xff] }
  0xd4   :  { %596 = vmatpush.msrb.mxu0 %v1827_v23  ;;  %638 = vmatpush.msrb.mxu1 %v1829_v24 }
  0xd5   :  { %680 = vmatpush.msrb.mxu2 %v1833_v25  ;;  %719 = vmatpush.msrb.mxu3 %v1847_v30 }
  0xd6   :  { %597 = vmatpush.msrb.mxu0 %v1839_v27  ;;  %639 = vmatpush.msrb.mxu1 %v1841_v28  ;;  %v311_v28 = vld [vmem:[#allocation6 + $0x30] sm:$0xff] }
  0xd7   :  { %681 = vmatpush.msrb.mxu2 %v1845_v29  ;;  %720 = vmatpush.msrb.mxu3 %v1859_v34  ;;  %v350_v29 = vld [vmem:[#allocation6 + $0x38] sm:$0xff] }
  0xd8   :  { %598 = vmatpush.msrb.mxu0 %v1851_v31  ;;  %640 = vmatpush.msrb.mxu1 %v1853_v32 }
  0xd9   :  { %682 = vmatpush.msrb.mxu2 %v1857_v33  ;;  %721 = vmatpush.msrb.mxu3 %v1871_v38 }
  0xda   :  { %599 = vmatpush.msrb.mxu0 %v1863_v35  ;;  %641 = vmatpush.msrb.mxu1 %v1865_v36 }
  0xdb   :  { %683 = vmatpush.msrb.mxu2 %v1869_v37  ;;  %722 = vmatpush.msrb.mxu3 %v1883_v42 }
  0xdc   :  { %600 = vmatpush.msrb.mxu0 %v1875_v39  ;;  %642 = vmatpush.msrb.mxu1 %v1877_v40 }
  0xdd   :  { %684 = vmatpush.msrb.mxu2 %v1881_v41  ;;  %723 = vmatpush.msrb.mxu3 %v1895_v46 }
  0xde   :  { %601 = vmatpush.msrb.mxu0 %v2643_v0  ;;  %643 = vmatpush.msrb.mxu1 %v2644_v1 }
  0xdf   :  { %685 = vmatpush.msrb.mxu2 %v2645_v2  ;;  %724 = vmatpush.msrb.mxu3 %v2646_v3 }
  0xe0   :  { %602 = vmatpush.msrb.mxu0 %v2647_v4  ;;  %644 = vmatpush.msrb.mxu1 %v2648_v5 }
  0xe1   :  { %686 = vmatpush.msrb.mxu2 %v2649_v6  ;;  %725 = vmatpush.msrb.mxu3 %v2650_v7 }
  0xe2   :  { %603 = vmatpush.msrb.mxu0 %v2651_v8  ;;  %645 = vmatpush.msrb.mxu1 %v2652_v9 }
  0xe3   :  { %687 = vmatpush.msrb.mxu2 %v2653_v10  ;;  %726 = vmatpush.msrb.mxu3 %v2654_v11 }
  0xe4   :  { %604 = vmatpush.msrb.mxu0 %v2655_v12  ;;  %646 = vmatpush.msrb.mxu1 %v2656_v13 }
  0xe5   :  { %688 = vmatpush.msrb.mxu2 %v2657_v14  ;;  %727 = vmatpush.msrb.mxu3 %v2658_v15 }
  0xe6   :  { %605 = vmatpush.msrb.mxu0 %v2659_v16  ;;  %647 = vmatpush.msrb.mxu1 %v2660_v17 }
  0xe7   :  { %689 = vmatpush.msrb.mxu2 %v2661_v18  ;;  %728 = vmatpush.msrb.mxu3 %v2662_v19 }
 0x143   :  { %v261_v22 = vpop.f32.mrf.mxu0  ;;  %v303_v23 = vpop.f32.mrf.mxu1 }
 0x144   :  { %v264_v24 = vadd.f32 %v261_v22, %v227_v20  ;;  %v306_v25 = vadd.f32 %v303_v23, %v269_v21  ;;  %v2165_v20 = vld [vmem:[#allocation2 + $0x1c0] sm:$0xff]  ;;  %v2167_v21 = vld [vmem:[#allocation2 + $0x1c8] sm:$0xff]  ;;  %v2169_v22 = vld [vmem:[#allocation2 + $0x1d0] sm:$0xff] }
 0x145   :  { %v2173_v23 = vld [vmem:[#allocation2 + $0x1d8] sm:$0xff] }
 0x146   :  { %v265_v26 = vmul.f32 0.5, %v264_v24  ;;  %v307_v27 = vmul.f32 0.5, %v306_v25  ;;  %v2177_v24 = vld [vmem:[#allocation2 + $0x1a0] sm:$0xff]  ;;  %v2179_v25 = vld [vmem:[#allocation2 + $0x1a8] sm:$0xff] }
 0x148   :  { %1523 = vtanh.f32 %v265_v26  ;;  %v2181_v26 = vld [vmem:[#allocation2 + $0x1b0] sm:$0xff] }
 0x149   :  { %1525 = vtanh.f32 %v307_v27  ;;  %v2185_v27 = vld [vmem:[#allocation2 + $0x1b8] sm:$0xff] }
 0x14a   :  { %v345_v30 = vpop.f32.mrf.mxu2  ;;  %v384_v31 = vpop.f32.mrf.mxu3 }
 0x14b   :  { %v348_v32 = vadd.f32 %v345_v30, %v311_v28  ;;  %v387_v33 = vadd.f32 %v384_v31, %v350_v29  ;;  %v2189_v28 = vld [vmem:[#allocation2 + $0x180] sm:$0xff]  ;;  %v2191_v29 = vld [vmem:[#allocation2 + $0x188] sm:$0xff]  ;;  %v2193_v30 = vld [vmem:[#allocation2 + $0x190] sm:$0xff] }
 0x14c   :  { %v2197_v31 = vld [vmem:[#allocation2 + $0x198] sm:$0xff] }
 0x14d   :  { %1527 = vtanh.f32 %v348_v32  ;;  %v388_v34 = vmul.f32 0.5, %v387_v33  ;;  %v2201_v32 = vld [vmem:[#allocation2 + $0x160] sm:$0xff]  ;;  %v2203_v33 = vld [vmem:[#allocation2 + $0x168] sm:$0xff] }
 0x14e   :  { %v1524_v35 = vpop.eup %1523 }
 0x14f   :  { %v1526_v36 = vpop.eup %1525  ;;  %v267_v37 = vmul.f32 0.5, %v1524_v35  ;;  %1529 = vtanh.f32 %v388_v34  ;;  %v2205_v34 = vld [vmem:[#allocation2 + $0x170] sm:$0xff]  ;;  %v2209_v35 = vld [vmem:[#allocation2 + $0x178] sm:$0xff] }
 0x150   :  { %v309_v38 = vmul.f32 0.5, %v1526_v36  ;;  %v2213_v36 = vld [vmem:[#allocation2 + $0x140] sm:$0xff] }
 0x151   :  { %v268_v39 = vadd.f32 0.5, %v267_v37  ;;  %v2215_v37 = vld [vmem:[#allocation2 + $0x148] sm:$0xff] }
 0x152   :  { %v310_v40 = vadd.f32 0.5, %v309_v38  ;;  %v2217_v38 = vld [vmem:[#allocation2 + $0x150] sm:$0xff] }
 0x153   :  { %v1528_v41 = vpop.eup %1527 }
 0x154   :  { %v392_v42 = vmul.f32 %v310_v40, %v2082_v49  ;;  %v393_v43 = vmul.f32 %v1528_v41, %v268_v39  ;;  %v2221_v39 = vld [vmem:[#allocation2 + $0x158] sm:$0xff]  ;;  %v2225_v40 = vld [vmem:[#allocation2 + $0x120] sm:$0xff]  ;;  %v2227_v41 = vld [vmem:[#allocation2 + $0x128] sm:$0xff] }
 0x155   :  { %v1530_v44 = vpop.eup %1529 }
 0x156   :  { %v394_v45 = vadd.f32 %v393_v43, %v392_v42  ;;  %v390_v46 = vmul.f32 0.5, %v1530_v44  ;;  %v2229_v42 = vld [vmem:[#allocation2 + $0x130] sm:$0xff]  ;;  %v2233_v43 = vld [vmem:[#allocation2 + $0x138] sm:$0xff]  ;;  %v2237_v44 = vld [vmem:[#allocation2 + $0x100] sm:$0xff] }
 0x158   :  { %1531 = vtanh.f32 %v394_v45  ;;  %v391_v47 = vadd.f32 0.5, %v390_v46  ;;  %v2241_v46 = vld [vmem:[#allocation2 + $0x110] sm:$0xff] }
 0x15e   :  { %v1532_v50 = vpop.eup %1531 }
 0x15f   :  { %v396_v55 = vmul.f32 %v1532_v50, %v391_v47  ;;  %v2245_v47 = vld [vmem:[#allocation2 + $0x118] sm:$0xff]  ;;  %v2249_v50 = vld [vmem:[#allocation2 + $0xe0] sm:$0xff] }
 0x161   :  { %398 = vst [vmem:[#allocation9 + $0x8] sm:$0xff] %v396_v55  ;;  %433 = vmatmul.f32.vlgmr.msra.gmra.mxu0 %v396_v55  ;;  %475 = vmatmul.f32.vlgmr.msra.gmra.mxu1 %v396_v55 }
 0x162   :  { %517 = vmatmul.f32.vlgmr.msra.gmra.mxu2 %v396_v55  ;;  %556 = vmatmul.f32.vlgmr.msra.gmra.mxu3 %v396_v55  ;;  %v2251_v55 = vld [vmem:[#allocation2 + $0xe8] sm:$0xff] }
 0x163   :  { %763 = vmatpush.msra.mxu0 %v2150_v61  ;;  %805 = vmatpush.msra.mxu1 %v2152_v63 }
 0x164   :  { %847 = vmatpush.msra.mxu2 %v2154_v51  ;;  %886 = vmatpush.msra.mxu3 %v2158_v54 }
 0x165   :  { %764 = vmatpush.msra.mxu0 %v2165_v20  ;;  %806 = vmatpush.msra.mxu1 %v2167_v21 }
 0x166   :  { %848 = vmatpush.msra.mxu2 %v2169_v22  ;;  %887 = vmatpush.msra.mxu3 %v2173_v23 }
 0x167   :  { %765 = vmatpush.msra.mxu0 %v2177_v24  ;;  %807 = vmatpush.msra.mxu1 %v2179_v25 }
 0x168   :  { %849 = vmatpush.msra.mxu2 %v2181_v26  ;;  %888 = vmatpush.msra.mxu3 %v2185_v27 }
 0x169   :  { %766 = vmatpush.msra.mxu0 %v2189_v28  ;;  %808 = vmatpush.msra.mxu1 %v2191_v29 }
 0x16a   :  { %850 = vmatpush.msra.mxu2 %v2193_v30  ;;  %889 = vmatpush.msra.mxu3 %v2197_v31 }
 0x16b   :  { %767 = vmatpush.msra.mxu0 %v2201_v32  ;;  %809 = vmatpush.msra.mxu1 %v2203_v33 }
 0x16c   :  { %851 = vmatpush.msra.mxu2 %v2205_v34  ;;  %890 = vmatpush.msra.mxu3 %v2209_v35 }
 0x16d   :  { %768 = vmatpush.msra.mxu0 %v2213_v36  ;;  %810 = vmatpush.msra.mxu1 %v2215_v37 }
 0x16e   :  { %852 = vmatpush.msra.mxu2 %v2217_v38  ;;  %891 = vmatpush.msra.mxu3 %v2221_v39 }
 0x16f   :  { %769 = vmatpush.msra.mxu0 %v2225_v40  ;;  %811 = vmatpush.msra.mxu1 %v2227_v41 }
 0x170   :  { %853 = vmatpush.msra.mxu2 %v2229_v42  ;;  %892 = vmatpush.msra.mxu3 %v2233_v43 }
 0x171   :  { %770 = vmatpush.msra.mxu0 %v2237_v44 }
 0x172   :  { %854 = vmatpush.msra.mxu2 %v2241_v46  ;;  %893 = vmatpush.msra.mxu3 %v2245_v47 }
 0x173   :  { %771 = vmatpush.msra.mxu0 %v2249_v50 }
 0x1de   :  { %v434_v52 = vpop.f32.mrf.mxu0  ;;  %v476_v53 = vpop.f32.mrf.mxu1 }
 0x1df   :  { %v437_v49 = vadd.f32 %v434_v52, %v400_v59  ;;  %v479_v56 = vadd.f32 %v476_v53, %v442_v60  ;;  %v2253_v59 = vld [vmem:[#allocation2 + $0xf0] sm:$0xff]  ;;  %v2257_v60 = vld [vmem:[#allocation2 + $0xf8] sm:$0xff]  ;;  %v2261_v52 = vld [vmem:[#allocation2 + $0xc0] sm:$0xff] }
 0x1e0   :  { %855 = vmatpush.msra.mxu2 %v2253_v59  ;;  %894 = vmatpush.msra.mxu3 %v2257_v60  ;;  %v2263_v53 = vld [vmem:[#allocation2 + $0xc8] sm:$0xff] }
 0x1e1   :  { %v438_v57 = vmul.f32 0.5, %v437_v49  ;;  %v480_v48 = vmul.f32 0.5, %v479_v56  ;;  %v2265_v49 = vld [vmem:[#allocation2 + $0xd0] sm:$0xff]  ;;  %772 = vmatpush.msra.mxu0 %v2261_v52  ;;  %v2269_v56 = vld [vmem:[#allocation2 + $0xd8] sm:$0xff] }
 0x1e2   :  { %856 = vmatpush.msra.mxu2 %v2265_v49  ;;  %895 = vmatpush.msra.mxu3 %v2269_v56 }
 0x1e3   :  { %1533 = vtanh.f32 %v438_v57  ;;  %v2273_v57 = vld [vmem:[#allocation2 + $0xa0] sm:$0xff] }
 0x1e4   :  { %1535 = vtanh.f32 %v480_v48  ;;  %v2275_v48 = vld [vmem:[#allocation2 + $0xa8] sm:$0xff]  ;;  %773 = vmatpush.msra.mxu0 %v2273_v57 }
 0x1e5   :  { %v518_v0 = vpop.f32.mrf.mxu2  ;;  %v557_v1 = vpop.f32.mrf.mxu3 }
 0x1e6   :  { %v521_v2 = vadd.f32 %v518_v0, %v484_v58  ;;  %v560_v3 = vadd.f32 %v557_v1, %v523_v62  ;;  %v2277_v58 = vld [vmem:[#allocation2 + $0xb0] sm:$0xff]  ;;  %v2281_v62 = vld [vmem:[#allocation2 + $0xb8] sm:$0xff]  ;;  %v2285_v0 = vld [vmem:[#allocation2 + $0x80] sm:$0xff] }
 0x1e7   :  { %857 = vmatpush.msra.mxu2 %v2277_v58  ;;  %896 = vmatpush.msra.mxu3 %v2281_v62  ;;  %2664 = vst [vmem:[#allocation22_spill] sm:$0xff] %v2285_v0  ;;  %v2287_v1 = vld [vmem:[#allocation2 + $0x88] sm:$0xff] }
 0x1e8   :  { %1537 = vtanh.f32 %v521_v2  ;;  %v561_v4 = vmul.f32 0.5, %v560_v3  ;;  %2665 = vst [vmem:[#allocation23_spill] sm:$0xff] %v2287_v1  ;;  %v2289_v2 = vld [vmem:[#allocation2 + $0x90] sm:$0xff]  ;;  %774 = vmatpush.msra.mxu0 %v2285_v0  ;;  %v2293_v3 = vld [vmem:[#allocation2 + $0x98] sm:$0xff] }
 0x1e9   :  { %v1534_v5 = vpop.eup %1533  ;;  %2666 = vst [vmem:[#allocation27_spill] sm:$0xff] %v2289_v2  ;;  %858 = vmatpush.msra.mxu2 %v2289_v2  ;;  %897 = vmatpush.msra.mxu3 %v2293_v3 }
 0x1ea   :  { %v1536_v6 = vpop.eup %1535  ;;  %v440_v7 = vmul.f32 0.5, %v1534_v5  ;;  %1539 = vtanh.f32 %v561_v4  ;;  %2667 = vst [vmem:[#allocation24_spill] sm:$0xff] %v2293_v3  ;;  %v2297_v4 = vld [vmem:[#allocation2 + $0x60] sm:$0xff]  ;;  %v2299_v5 = vld [vmem:[#allocation2 + $0x68] sm:$0xff] }
 0x1eb   :  { %v482_v8 = vmul.f32 0.5, %v1536_v6  ;;  %2668 = vst [vmem:[#allocation25_spill] sm:$0xff] %v2297_v4  ;;  %v2301_v6 = vld [vmem:[#allocation2 + $0x70] sm:$0xff]  ;;  %775 = vmatpush.msra.mxu0 %v2297_v4 }
 0x1ec   :  { %v441_v9 = vadd.f32 0.5, %v440_v7  ;;  %2669 = vst [vmem:[#allocation26_spill] sm:$0xff] %v2299_v5  ;;  %v2305_v7 = vld [vmem:[#allocation2 + $0x78] sm:$0xff]  ;;  %859 = vmatpush.msra.mxu2 %v2301_v6 }
 0x1ed   :  { %v483_v10 = vadd.f32 0.5, %v482_v8  ;;  %2670 = vst [vmem:[#allocation31_spill] sm:$0xff] %v2301_v6  ;;  %898 = vmatpush.msra.mxu3 %v2305_v7  ;;  %v2309_v8 = vld [vmem:[#allocation2 + $0x40] sm:$0xff] }
 0x1ee   :  { %v1538_v11 = vpop.eup %1537  ;;  %2671 = vst [vmem:[#allocation28_spill] sm:$0xff] %v2305_v7  ;;  %776 = vmatpush.msra.mxu0 %v2309_v8 }
 0x1ef   :  { %v565_v12 = vmul.f32 %v483_v10, %v394_v45  ;;  %v566_v13 = vmul.f32 %v1538_v11, %v441_v9  ;;  %v2239_v45 = vld [vmem:[#allocation2 + $0x108] sm:$0xff]  ;;  %2672 = vst [vmem:[#allocation29_spill] sm:$0xff] %v2309_v8  ;;  %v2313_v10 = vld [vmem:[#allocation2 + $0x50] sm:$0xff]  ;;  %v2317_v11 = vld [vmem:[#allocation2 + $0x58] sm:$0xff] }
 0x1f0   :  { %v1540_v14 = vpop.eup %1539  ;;  %812 = vmatpush.msra.mxu1 %v2239_v45  ;;  %v2311_v9 = vld [vmem:[#allocation2 + $0x48] sm:$0xff]  ;;  %2674 = vst [vmem:[#allocation35_spill] sm:$0xff] %v2313_v10  ;;  %860 = vmatpush.msra.mxu2 %v2313_v10 }
 0x1f1   :  { %v2162_v15 = vadd.f32 %v566_v13, %v565_v12  ;;  %v563_v16 = vmul.f32 0.5, %v1540_v14  ;;  %2673 = vst [vmem:[#allocation30_spill] sm:$0xff] %v2311_v9  ;;  %899 = vmatpush.msra.mxu3 %v2317_v11  ;;  %v2321_v12 = vld [vmem:[#allocation2 + $0x20] sm:$0xff]  ;;  %v2323_v13 = vld [vmem:[#allocation2 + $0x28] sm:$0xff]  ;;  %v2325_v14 = vld [vmem:[#allocation2 + $0x30] sm:$0xff] }
 0x1f2   :  { %813 = vmatpush.msra.mxu1 %v2251_v55  ;;  %2675 = vst [vmem:[#allocation32_spill] sm:$0xff] %v2317_v11  ;;  %777 = vmatpush.msra.mxu0 %v2321_v12  ;;  %v2341_v11 = vld [vmem:[#allocation2 + $0x18] sm:$0xff] }
 0x1f3   :  { %1541 = vtanh.f32 %v2162_v15  ;;  %v564_v17 = vadd.f32 0.5, %v563_v16  ;;  %2676 = vst [vmem:[#allocation33_spill] sm:$0xff] %v2321_v12  ;;  %v2329_v16 = vld [vmem:[#allocation2 + $0x38] sm:$0xff]  ;;  %861 = vmatpush.msra.mxu2 %v2325_v14  ;;  %v573_v12 = vld [vmem:[#allocation6 + $0x60] sm:$0xff] }
 0x1f4   :  { %814 = vmatpush.msra.mxu1 %v2263_v53  ;;  %2677 = vst [vmem:[#allocation34_spill] sm:$0xff] %v2323_v13  ;;  %900 = vmatpush.msra.mxu3 %v2329_v16 }
 0x1f5   :  { %2678 = vst [vmem:[#allocation39_spill] sm:$0xff] %v2325_v14 }
 0x1f6   :  { %815 = vmatpush.msra.mxu1 %v2275_v48  ;;  %2679 = vst [vmem:[#allocation36_spill] sm:$0xff] %v2329_v16  ;;  %901 = vmatpush.msra.mxu3 %v2341_v11 }
 0x1f7   :  { %2683 = vst [vmem:[#allocation41_spill] sm:$0xff] %v2341_v11 }
 0x1f8   :  { %816 = vmatpush.msra.mxu1 %v2287_v1 }
 0x1f9   :  { %v1542_v18 = vpop.eup %1541 }
 0x1fa   :  { %v569_v19 = vmul.f32 %v1542_v18, %v564_v17  ;;  %817 = vmatpush.msra.mxu1 %v2299_v5  ;;  %v2333_v17 = vld [vmem:[#allocation2] sm:$0xff]  ;;  %v2335_v18 = vld [vmem:[#allocation2 + $0x8] sm:$0xff] }
 0x1fb   :  { %2680 = vst [vmem:[#allocation37_spill] sm:$0xff] %v2333_v17  ;;  %778 = vmatpush.msra.mxu0 %v2333_v17 }
 0x1fc   :  { %571 = vst [vmem:[#allocation9 + $0x10] sm:$0xff] %v569_v19  ;;  %606 = vmatmul.f32.vlgmr.msrb.gmra.mxu0 %v569_v19  ;;  %648 = vmatmul.f32.vlgmr.msrb.gmra.mxu1 %v569_v19 }
 0x1fd   :  { %690 = vmatmul.f32.vlgmr.msrb.gmra.mxu2 %v569_v19  ;;  %729 = vmatmul.f32.vlgmr.msrb.gmra.mxu3 %v569_v19  ;;  %2681 = vst [vmem:[#allocation38_spill] sm:$0xff] %v2335_v18  ;;  %v2337_v19 = vld [vmem:[#allocation2 + $0x10] sm:$0xff] }
 0x1fe   :  { %818 = vmatpush.msra.mxu1 %v2311_v9  ;;  %2682 = vst [vmem:[#allocation40_spill] sm:$0xff] %v2337_v19  ;;  %862 = vmatpush.msra.mxu2 %v2337_v19 }
 0x1ff   :  { %936 = vmatpush.msrb.mxu0 %v2150_v61  ;;  %1059 = vmatpush.msrb.mxu3 %v2158_v54 }
 0x200   :  { %819 = vmatpush.msra.mxu1 %v2323_v13  ;;  %v615_v13 = vld [vmem:[#allocation6 + $0x68] sm:$0xff]  ;;  %1020 = vmatpush.msrb.mxu2 %v2154_v51 }
 0x201   :  { %937 = vmatpush.msrb.mxu0 %v2165_v20  ;;  %1060 = vmatpush.msrb.mxu3 %v2173_v23 }
 0x202   :  { %820 = vmatpush.msra.mxu1 %v2335_v18  ;;  %1021 = vmatpush.msrb.mxu2 %v2169_v22 }
 0x203   :  { %938 = vmatpush.msrb.mxu0 %v2177_v24  ;;  %1061 = vmatpush.msrb.mxu3 %v2185_v27 }
 0x204   :  { %978 = vmatpush.msrb.mxu1 %v2152_v63  ;;  %1022 = vmatpush.msrb.mxu2 %v2181_v26 }
 0x205   :  { %939 = vmatpush.msrb.mxu0 %v2189_v28  ;;  %1062 = vmatpush.msrb.mxu3 %v2197_v31 }
 0x206   :  { %979 = vmatpush.msrb.mxu1 %v2167_v21  ;;  %1023 = vmatpush.msrb.mxu2 %v2193_v30 }
 0x207   :  { %940 = vmatpush.msrb.mxu0 %v2201_v32  ;;  %1063 = vmatpush.msrb.mxu3 %v2209_v35 }
 0x208   :  { %980 = vmatpush.msrb.mxu1 %v2179_v25  ;;  %1024 = vmatpush.msrb.mxu2 %v2205_v34 }
 0x209   :  { %941 = vmatpush.msrb.mxu0 %v2213_v36  ;;  %1064 = vmatpush.msrb.mxu3 %v2221_v39 }
 0x20a   :  { %981 = vmatpush.msrb.mxu1 %v2191_v29  ;;  %1025 = vmatpush.msrb.mxu2 %v2217_v38 }
 0x20b   :  { %942 = vmatpush.msrb.mxu0 %v2225_v40  ;;  %1065 = vmatpush.msrb.mxu3 %v2233_v43 }
 0x20c   :  { %982 = vmatpush.msrb.mxu1 %v2203_v33  ;;  %1026 = vmatpush.msrb.mxu2 %v2229_v42 }
 0x20d   :  { %943 = vmatpush.msrb.mxu0 %v2237_v44  ;;  %1066 = vmatpush.msrb.mxu3 %v2245_v47 }
 0x20e   :  { %983 = vmatpush.msrb.mxu1 %v2215_v37  ;;  %1027 = vmatpush.msrb.mxu2 %v2241_v46 }
 0x20f   :  { %944 = vmatpush.msrb.mxu0 %v2249_v50  ;;  %1067 = vmatpush.msrb.mxu3 %v2257_v60 }
 0x210   :  { %984 = vmatpush.msrb.mxu1 %v2227_v41  ;;  %1028 = vmatpush.msrb.mxu2 %v2253_v59 }
 0x211   :  { %945 = vmatpush.msrb.mxu0 %v2261_v52  ;;  %1068 = vmatpush.msrb.mxu3 %v2269_v56 }
 0x212   :  { %985 = vmatpush.msrb.mxu1 %v2239_v45  ;;  %1029 = vmatpush.msrb.mxu2 %v2265_v49 }
 0x213   :  { %946 = vmatpush.msrb.mxu0 %v2273_v57  ;;  %1069 = vmatpush.msrb.mxu3 %v2281_v62 }
 0x214   :  { %986 = vmatpush.msrb.mxu1 %v2251_v55  ;;  %1030 = vmatpush.msrb.mxu2 %v2277_v58 }
 0x215   :  { %947 = vmatpush.msrb.mxu0 %v2285_v0  ;;  %1070 = vmatpush.msrb.mxu3 %v2293_v3 }
 0x216   :  { %987 = vmatpush.msrb.mxu1 %v2263_v53  ;;  %1031 = vmatpush.msrb.mxu2 %v2289_v2 }
 0x217   :  { %948 = vmatpush.msrb.mxu0 %v2297_v4  ;;  %1071 = vmatpush.msrb.mxu3 %v2305_v7  ;;  %v2690_v7 = vld [vmem:[#allocation37_spill] sm:$0xff] }
 0x218   :  { %988 = vmatpush.msrb.mxu1 %v2275_v48  ;;  %1032 = vmatpush.msrb.mxu2 %v2301_v6 }
 0x219   :  { %949 = vmatpush.msrb.mxu0 %v2309_v8  ;;  %v2691_v8 = vld [vmem:[#allocation38_spill] sm:$0xff] }
 0x21a   :  { %989 = vmatpush.msrb.mxu1 %v2287_v1  ;;  %1033 = vmatpush.msrb.mxu2 %v2313_v10 }
 0x21c   :  { %990 = vmatpush.msrb.mxu1 %v2299_v5 }
 0x21e   :  { %991 = vmatpush.msrb.mxu1 %v2311_v9 }
 0x279   :  { %v607_v16 = vpop.f32.mrf.mxu0  ;;  %v649_v14 = vpop.f32.mrf.mxu1 }
 0x27a   :  { %v610_v17 = vadd.f32 %v607_v16, %v573_v12  ;;  %v652_v18 = vadd.f32 %v649_v14, %v615_v13  ;;  %v657_v12 = vld [vmem:[#allocation6 + $0x70] sm:$0xff]  ;;  %v696_v13 = vld [vmem:[#allocation6 + $0x78] sm:$0xff] }
 0x27c   :  { %v611_v11 = vmul.f32 0.5, %v610_v17  ;;  %v653_v61 = vmul.f32 0.5, %v652_v18 }
 0x27e   :  { %1543 = vtanh.f32 %v611_v11 }
 0x27f   :  { %1545 = vtanh.f32 %v653_v61 }
 0x280   :  { %v691_v14 = vpop.f32.mrf.mxu2  ;;  %v730_v16 = vpop.f32.mrf.mxu3 }
 0x281   :  { %v694_v17 = vadd.f32 %v691_v14, %v657_v12  ;;  %v733_v18 = vadd.f32 %v730_v16, %v696_v13 }
 0x283   :  { %1547 = vtanh.f32 %v694_v17  ;;  %v734_v61 = vmul.f32 0.5, %v733_v18 }
 0x284   :  { %v1544_v11 = vpop.eup %1543 }
 0x285   :  { %v1546_v12 = vpop.eup %1545  ;;  %v613_v13 = vmul.f32 0.5, %v1544_v11  ;;  %1549 = vtanh.f32 %v734_v61 }
 0x286   :  { %v655_v14 = vmul.f32 0.5, %v1546_v12 }
 0x287   :  { %v614_v16 = vadd.f32 0.5, %v613_v13 }
 0x288   :  { %v656_v17 = vadd.f32 0.5, %v655_v14 }
 0x289   :  { %v1548_v18 = vpop.eup %1547 }
 0x28a   :  { %v738_v61 = vmul.f32 %v656_v17, %v2162_v15  ;;  %v739_v11 = vmul.f32 %v1548_v18, %v614_v16  ;;  %v2685_v16 = vld [vmem:[#allocation32_spill] sm:$0xff]  ;;  %v2686_v18 = vld [vmem:[#allocation33_spill] sm:$0xff] }
 0x28b   :  { %v1550_v12 = vpop.eup %1549  ;;  %1072 = vmatpush.msrb.mxu3 %v2685_v16  ;;  %950 = vmatpush.msrb.mxu0 %v2686_v18  ;;  %v2693_v18 = vld [vmem:[#allocation21_spill] sm:$0xff] }
 0x28c   :  { %v2386_v13 = vadd.f32 %v739_v11, %v738_v61  ;;  %v736_v15 = vmul.f32 0.5, %v1550_v12  ;;  %v2687_v61 = vld [vmem:[#allocation34_spill] sm:$0xff]  ;;  %v2688_v12 = vld [vmem:[#allocation39_spill] sm:$0xff] }
 0x28d   :  { %992 = vmatpush.msrb.mxu1 %v2687_v61  ;;  %1034 = vmatpush.msrb.mxu2 %v2688_v12 }
 0x28e   :  { %2684 = vst [vmem:[#allocation42_spill] sm:$0xff] %v2386_v13  ;;  %1551 = vtanh.f32 %v2386_v13  ;;  %v737_v14 = vadd.f32 0.5, %v736_v15  ;;  %v2689_v13 = vld [vmem:[#allocation36_spill] sm:$0xff]  ;;  %951 = vmatpush.msrb.mxu0 %v2690_v7  ;;  %v2692_v15 = vld [vmem:[#allocation41_spill] sm:$0xff] }
 0x28f   :  { %1073 = vmatpush.msrb.mxu3 %v2689_v13  ;;  %993 = vmatpush.msrb.mxu1 %v2691_v8 }
 0x290   :  { %1035 = vmatpush.msrb.mxu2 %v2337_v19 }
 0x291   :  { %1074 = vmatpush.msrb.mxu3 %v2692_v15 }
 0x294   :  { %v1552_v17 = vpop.eup %1551 }
 0x295   :  { %v742_v11 = vmul.f32 %v1552_v17, %v737_v14  ;;  %v2694_v14 = vld [vmem:[#allocation28_spill] sm:$0xff]  ;;  %v2695_v17 = vld [vmem:[#allocation29_spill] sm:$0xff] }
 0x297   :  { %744 = vst [vmem:[#allocation9 + $0x18] sm:$0xff] %v742_v11  ;;  %779 = vmatmul.f32.vlgmr.msra.gmra.mxu0 %v742_v11  ;;  %821 = vmatmul.f32.vlgmr.msra.gmra.mxu1 %v742_v11 }
 0x298   :  { %863 = vmatmul.f32.vlgmr.msra.gmra.mxu2 %v742_v11  ;;  %902 = vmatmul.f32.vlgmr.msra.gmra.mxu3 %v742_v11  ;;  %v2696_v11 = vld [vmem:[#allocation33_spill] sm:$0xff] }
 0x299   :  { %1109 = vmatpush.msra.mxu0 %v2693_v18  ;;  %1151 = vmatpush.msra.mxu1 %v2152_v63 }
 0x29a   :  { %1193 = vmatpush.msra.mxu2 %v2154_v51  ;;  %1232 = vmatpush.msra.mxu3 %v2158_v54 }
 0x29b   :  { %1110 = vmatpush.msra.mxu0 %v2165_v20  ;;  %1152 = vmatpush.msra.mxu1 %v2167_v21 }
 0x29c   :  { %1194 = vmatpush.msra.mxu2 %v2169_v22  ;;  %1233 = vmatpush.msra.mxu3 %v2173_v23 }
 0x29d   :  { %1111 = vmatpush.msra.mxu0 %v2177_v24  ;;  %1153 = vmatpush.msra.mxu1 %v2179_v25 }
 0x29e   :  { %1195 = vmatpush.msra.mxu2 %v2181_v26  ;;  %1234 = vmatpush.msra.mxu3 %v2185_v27 }
 0x29f   :  { %1112 = vmatpush.msra.mxu0 %v2189_v28  ;;  %1154 = vmatpush.msra.mxu1 %v2191_v29 }
 0x2a0   :  { %1196 = vmatpush.msra.mxu2 %v2193_v30  ;;  %1235 = vmatpush.msra.mxu3 %v2197_v31 }
 0x2a1   :  { %1113 = vmatpush.msra.mxu0 %v2201_v32  ;;  %1155 = vmatpush.msra.mxu1 %v2203_v33 }
 0x2a2   :  { %1197 = vmatpush.msra.mxu2 %v2205_v34  ;;  %1236 = vmatpush.msra.mxu3 %v2209_v35 }
 0x2a3   :  { %1114 = vmatpush.msra.mxu0 %v2213_v36  ;;  %1156 = vmatpush.msra.mxu1 %v2215_v37 }
 0x2a4   :  { %1198 = vmatpush.msra.mxu2 %v2217_v38  ;;  %1237 = vmatpush.msra.mxu3 %v2221_v39 }
 0x2a5   :  { %1115 = vmatpush.msra.mxu0 %v2225_v40  ;;  %1157 = vmatpush.msra.mxu1 %v2227_v41 }
 0x2a6   :  { %1199 = vmatpush.msra.mxu2 %v2229_v42  ;;  %1238 = vmatpush.msra.mxu3 %v2233_v43 }
 0x2a7   :  { %1116 = vmatpush.msra.mxu0 %v2237_v44  ;;  %1158 = vmatpush.msra.mxu1 %v2239_v45 }
 0x2a8   :  { %1200 = vmatpush.msra.mxu2 %v2241_v46  ;;  %1239 = vmatpush.msra.mxu3 %v2245_v47 }
 0x2a9   :  { %1117 = vmatpush.msra.mxu0 %v2249_v50  ;;  %1159 = vmatpush.msra.mxu1 %v2251_v55 }
 0x2aa   :  { %1201 = vmatpush.msra.mxu2 %v2253_v59  ;;  %1240 = vmatpush.msra.mxu3 %v2257_v60 }
 0x2ab   :  { %1118 = vmatpush.msra.mxu0 %v2261_v52  ;;  %1160 = vmatpush.msra.mxu1 %v2263_v53 }
 0x2ac   :  { %1202 = vmatpush.msra.mxu2 %v2265_v49  ;;  %1241 = vmatpush.msra.mxu3 %v2269_v56 }
 0x2ad   :  { %1119 = vmatpush.msra.mxu0 %v2273_v57  ;;  %1161 = vmatpush.msra.mxu1 %v2275_v48 }
 0x2ae   :  { %1203 = vmatpush.msra.mxu2 %v2277_v58  ;;  %1242 = vmatpush.msra.mxu3 %v2281_v62 }
 0x2af   :  { %1120 = vmatpush.msra.mxu0 %v2285_v0  ;;  %1162 = vmatpush.msra.mxu1 %v2287_v1 }
 0x2b0   :  { %1204 = vmatpush.msra.mxu2 %v2289_v2  ;;  %1243 = vmatpush.msra.mxu3 %v2293_v3 }
 0x2b1   :  { %1121 = vmatpush.msra.mxu0 %v2297_v4  ;;  %1163 = vmatpush.msra.mxu1 %v2299_v5  ;;  %v869_v5 = vld [vmem:[#allocation6 + $0x98] sm:$0xff] }
 0x2b2   :  { %1205 = vmatpush.msra.mxu2 %v2301_v6  ;;  %1244 = vmatpush.msra.mxu3 %v2694_v14 }
 0x2b3   :  { %1122 = vmatpush.msra.mxu0 %v2695_v17  ;;  %1164 = vmatpush.msra.mxu1 %v2311_v9  ;;  %v746_v9 = vld [vmem:[#allocation6 + $0x80] sm:$0xff] }
 0x2b4   :  { %1206 = vmatpush.msra.mxu2 %v2313_v10  ;;  %1245 = vmatpush.msra.mxu3 %v2685_v16  ;;  %v788_v10 = vld [vmem:[#allocation6 + $0x88] sm:$0xff] }
 0x2b5   :  { %1123 = vmatpush.msra.mxu0 %v2696_v11  ;;  %1165 = vmatpush.msra.mxu1 %v2687_v61 }
 0x2b6   :  { %1207 = vmatpush.msra.mxu2 %v2688_v12  ;;  %1246 = vmatpush.msra.mxu3 %v2689_v13  ;;  %v830_v12 = vld [vmem:[#allocation6 + $0x90] sm:$0xff] }
 0x2b7   :  { %1124 = vmatpush.msra.mxu0 %v2690_v7  ;;  %1166 = vmatpush.msra.mxu1 %v2691_v8 }
 0x2b8   :  { %1208 = vmatpush.msra.mxu2 %v2337_v19  ;;  %1247 = vmatpush.msra.mxu3 %v2692_v15 }
 0x314   :  { %v780_v17 = vpop.f32.mrf.mxu0  ;;  %v822_v16 = vpop.f32.mrf.mxu1 }
 0x315   :  { %v783_v14 = vadd.f32 %v780_v17, %v746_v9  ;;  %v825_v11 = vadd.f32 %v822_v16, %v788_v10  ;;  %v2697_v16 = vld [vmem:[#allocation42_spill] sm:$0xff] }
 0x317   :  { %v784_v6 = vmul.f32 0.5, %v783_v14  ;;  %v826_v61 = vmul.f32 0.5, %v825_v11 }
 0x319   :  { %1553 = vtanh.f32 %v784_v6 }
 0x31a   :  { %1555 = vtanh.f32 %v826_v61  ;;  %v1092_v61 = vld [vmem:[#allocation6 + $0xc0] sm:$0xff] }
 0x31b   :  { %v864_v13 = vpop.f32.mrf.mxu2  ;;  %v903_v7 = vpop.f32.mrf.mxu3 }
 0x31c   :  { %v867_v4 = vadd.f32 %v864_v13, %v830_v12  ;;  %v906_v8 = vadd.f32 %v903_v7, %v869_v5  ;;  %v1134_v12 = vld [vmem:[#allocation6 + $0xc8] sm:$0xff] }
 0x31e   :  { %1557 = vtanh.f32 %v867_v4  ;;  %v907_v19 = vmul.f32 0.5, %v906_v8 }
 0x31f   :  { %v1554_v3 = vpop.eup %1553 }
 0x320   :  { %v1556_v15 = vpop.eup %1555  ;;  %v786_v2 = vmul.f32 0.5, %v1554_v3  ;;  %1559 = vtanh.f32 %v907_v19 }
 0x321   :  { %v828_v1 = vmul.f32 0.5, %v1556_v15 }
 0x322   :  { %v787_v0 = vadd.f32 0.5, %v786_v2 }
 0x323   :  { %v829_v9 = vadd.f32 0.5, %v828_v1 }
 0x324   :  { %v1558_v10 = vpop.eup %1557 }
 0x325   :  { %v911_v14 = vmul.f32 %v829_v9, %v2697_v16  ;;  %v912_v6 = vmul.f32 %v1558_v10, %v787_v0 }
 0x326   :  { %v1560_v17 = vpop.eup %1559 }
 0x327   :  { %v2478_v11 = vadd.f32 %v912_v6, %v911_v14  ;;  %v909_v13 = vmul.f32 0.5, %v1560_v17  ;;  %v1176_v17 = vld [vmem:[#allocation6 + $0xd0] sm:$0xff] }
 0x329   :  { %1561 = vtanh.f32 %v2478_v11  ;;  %v910_v5 = vadd.f32 0.5, %v909_v13 }
 0x32f   :  { %v1562_v4 = vpop.eup %1561 }
 0x330   :  { %v915_v7 = vmul.f32 %v1562_v4, %v910_v5 }
 0x332   :  { %917 = vst [vmem:[#allocation9 + $0x20] sm:$0xff] %v915_v7  ;;  %952 = vmatmul.f32.vlgmr.msrb.gmra.mxu0 %v915_v7  ;;  %994 = vmatmul.f32.vlgmr.msrb.gmra.mxu1 %v915_v7 }
 0x333   :  { %1036 = vmatmul.f32.vlgmr.msrb.gmra.mxu2 %v915_v7  ;;  %1075 = vmatmul.f32.vlgmr.msrb.gmra.mxu3 %v915_v7 }
 0x334   :  { %1282 = vmatpush.msrb.mxu0 %v2693_v18  ;;  %1324 = vmatpush.msrb.mxu1 %v2152_v63  ;;  %v2698_v63 = vld [vmem:[#allocation22_spill] sm:$0xff] }
 0x335   :  { %1366 = vmatpush.msrb.mxu2 %v2154_v51  ;;  %1405 = vmatpush.msrb.mxu3 %v2158_v54  ;;  %v2699_v51 = vld [vmem:[#allocation23_spill] sm:$0xff] }
 0x336   :  { %1283 = vmatpush.msrb.mxu0 %v2165_v20  ;;  %1325 = vmatpush.msrb.mxu1 %v2167_v21  ;;  %v2700_v54 = vld [vmem:[#allocation27_spill] sm:$0xff]  ;;  %v2701_v20 = vld [vmem:[#allocation24_spill] sm:$0xff]  ;;  %v2702_v21 = vld [vmem:[#allocation25_spill] sm:$0xff] }
 0x337   :  { %1367 = vmatpush.msrb.mxu2 %v2169_v22  ;;  %1406 = vmatpush.msrb.mxu3 %v2173_v23  ;;  %v2703_v22 = vld [vmem:[#allocation26_spill] sm:$0xff]  ;;  %v2704_v23 = vld [vmem:[#allocation31_spill] sm:$0xff] }
 0x338   :  { %1284 = vmatpush.msrb.mxu0 %v2177_v24  ;;  %1326 = vmatpush.msrb.mxu1 %v2179_v25  ;;  %v2705_v24 = vld [vmem:[#allocation28_spill] sm:$0xff]  ;;  %v2706_v25 = vld [vmem:[#allocation29_spill] sm:$0xff] }
 0x339   :  { %1368 = vmatpush.msrb.mxu2 %v2181_v26  ;;  %1407 = vmatpush.msrb.mxu3 %v2185_v27  ;;  %v2707_v26 = vld [vmem:[#allocation30_spill] sm:$0xff]  ;;  %v2708_v27 = vld [vmem:[#allocation35_spill] sm:$0xff] }
 0x33a   :  { %1285 = vmatpush.msrb.mxu0 %v2189_v28  ;;  %1327 = vmatpush.msrb.mxu1 %v2191_v29  ;;  %v2709_v28 = vld [vmem:[#allocation32_spill] sm:$0xff]  ;;  %v2710_v29 = vld [vmem:[#allocation33_spill] sm:$0xff] }
 0x33b   :  { %1369 = vmatpush.msrb.mxu2 %v2193_v30  ;;  %1408 = vmatpush.msrb.mxu3 %v2197_v31  ;;  %v2711_v30 = vld [vmem:[#allocation34_spill] sm:$0xff]  ;;  %v2712_v31 = vld [vmem:[#allocation39_spill] sm:$0xff] }
 0x33c   :  { %1286 = vmatpush.msrb.mxu0 %v2201_v32  ;;  %1328 = vmatpush.msrb.mxu1 %v2203_v33  ;;  %v2713_v32 = vld [vmem:[#allocation36_spill] sm:$0xff]  ;;  %v2714_v33 = vld [vmem:[#allocation37_spill] sm:$0xff] }
 0x33d   :  { %1370 = vmatpush.msrb.mxu2 %v2205_v34  ;;  %1409 = vmatpush.msrb.mxu3 %v2209_v35  ;;  %v2715_v34 = vld [vmem:[#allocation38_spill] sm:$0xff]  ;;  %v2716_v35 = vld [vmem:[#allocation40_spill] sm:$0xff] }
 0x33e   :  { %1287 = vmatpush.msrb.mxu0 %v2213_v36  ;;  %1329 = vmatpush.msrb.mxu1 %v2215_v37  ;;  %v2717_v36 = vld [vmem:[#allocation41_spill] sm:$0xff]  ;;  %v919_v37 = vld [vmem:[#allocation6 + $0xa0] sm:$0xff] }
 0x33f   :  { %1371 = vmatpush.msrb.mxu2 %v2217_v38  ;;  %1410 = vmatpush.msrb.mxu3 %v2221_v39  ;;  %v961_v38 = vld [vmem:[#allocation6 + $0xa8] sm:$0xff] }
 0x340   :  { %1288 = vmatpush.msrb.mxu0 %v2225_v40  ;;  %1330 = vmatpush.msrb.mxu1 %v2227_v41 }
 0x341   :  { %1372 = vmatpush.msrb.mxu2 %v2229_v42  ;;  %1411 = vmatpush.msrb.mxu3 %v2233_v43 }
 0x342   :  { %1289 = vmatpush.msrb.mxu0 %v2237_v44  ;;  %1331 = vmatpush.msrb.mxu1 %v2239_v45  ;;  %v1003_v45 = vld [vmem:[#allocation6 + $0xb0] sm:$0xff] }
 0x343   :  { %1373 = vmatpush.msrb.mxu2 %v2241_v46  ;;  %1412 = vmatpush.msrb.mxu3 %v2245_v47  ;;  %v1042_v46 = vld [vmem:[#allocation6 + $0xb8] sm:$0xff] }
 0x344   :  { %1290 = vmatpush.msrb.mxu0 %v2249_v50  ;;  %1332 = vmatpush.msrb.mxu1 %v2251_v55 }
 0x345   :  { %1374 = vmatpush.msrb.mxu2 %v2253_v59  ;;  %1413 = vmatpush.msrb.mxu3 %v2257_v60 }
 0x346   :  { %1291 = vmatpush.msrb.mxu0 %v2261_v52  ;;  %1333 = vmatpush.msrb.mxu1 %v2263_v53 }
 0x347   :  { %1375 = vmatpush.msrb.mxu2 %v2265_v49  ;;  %1414 = vmatpush.msrb.mxu3 %v2269_v56 }
 0x348   :  { %1292 = vmatpush.msrb.mxu0 %v2273_v57  ;;  %1334 = vmatpush.msrb.mxu1 %v2275_v48 }
 0x349   :  { %1376 = vmatpush.msrb.mxu2 %v2277_v58  ;;  %1415 = vmatpush.msrb.mxu3 %v2281_v62 }
 0x34a   :  { %1293 = vmatpush.msrb.mxu0 %v2698_v63  ;;  %1335 = vmatpush.msrb.mxu1 %v2699_v51 }
 0x34b   :  { %1377 = vmatpush.msrb.mxu2 %v2700_v54  ;;  %1416 = vmatpush.msrb.mxu3 %v2701_v20 }
 0x34c   :  { %1294 = vmatpush.msrb.mxu0 %v2702_v21  ;;  %1336 = vmatpush.msrb.mxu1 %v2703_v22 }
 0x34d   :  { %1378 = vmatpush.msrb.mxu2 %v2704_v23  ;;  %1417 = vmatpush.msrb.mxu3 %v2705_v24 }
 0x34e   :  { %1295 = vmatpush.msrb.mxu0 %v2706_v25  ;;  %1337 = vmatpush.msrb.mxu1 %v2707_v26 }
 0x34f   :  { %1379 = vmatpush.msrb.mxu2 %v2708_v27  ;;  %1418 = vmatpush.msrb.mxu3 %v2709_v28 }
 0x350   :  { %1296 = vmatpush.msrb.mxu0 %v2710_v29  ;;  %1338 = vmatpush.msrb.mxu1 %v2711_v30 }
 0x351   :  { %1380 = vmatpush.msrb.mxu2 %v2712_v31  ;;  %1419 = vmatpush.msrb.mxu3 %v2713_v32 }
 0x352   :  { %1297 = vmatpush.msrb.mxu0 %v2714_v33  ;;  %1339 = vmatpush.msrb.mxu1 %v2715_v34  ;;  %v1265_v33 = vld [vmem:[#allocation6 + $0xe0] sm:$0xff]  ;;  %v1307_v34 = vld [vmem:[#allocation6 + $0xe8] sm:$0xff] }
 0x353   :  { %1381 = vmatpush.msrb.mxu2 %v2716_v35  ;;  %1420 = vmatpush.msrb.mxu3 %v2717_v36 }
 0x3af   :  { %v953_v39 = vpop.f32.mrf.mxu0  ;;  %v995_v40 = vpop.f32.mrf.mxu1 }
 0x3b0   :  { %v956_v41 = vadd.f32 %v953_v39, %v919_v37  ;;  %v998_v42 = vadd.f32 %v995_v40, %v961_v38 }
 0x3b2   :  { %v957_v43 = vmul.f32 0.5, %v956_v41  ;;  %v999_v44 = vmul.f32 0.5, %v998_v42  ;;  %v1349_v41 = vld [vmem:[#allocation6 + $0xf0] sm:$0xff]  ;;  %v1388_v42 = vld [vmem:[#allocation6 + $0xf8] sm:$0xff] }
 0x3b4   :  { %1563 = vtanh.f32 %v957_v43 }
 0x3b5   :  { %1565 = vtanh.f32 %v999_v44 }
 0x3b6   :  { %v1037_v47 = vpop.f32.mrf.mxu2  ;;  %v1076_v50 = vpop.f32.mrf.mxu3 }
 0x3b7   :  { %v1040_v55 = vadd.f32 %v1037_v47, %v1003_v45  ;;  %v1079_v59 = vadd.f32 %v1076_v50, %v1042_v46 }
 0x3b9   :  { %1567 = vtanh.f32 %v1040_v55  ;;  %v1080_v60 = vmul.f32 0.5, %v1079_v59 }
 0x3ba   :  { %v1564_v52 = vpop.eup %1563 }
 0x3bb   :  { %v1566_v53 = vpop.eup %1565  ;;  %v959_v49 = vmul.f32 0.5, %v1564_v52  ;;  %1569 = vtanh.f32 %v1080_v60 }
 0x3bc   :  { %v1001_v56 = vmul.f32 0.5, %v1566_v53 }
 0x3bd   :  { %v960_v57 = vadd.f32 0.5, %v959_v49 }
 0x3be   :  { %v1002_v48 = vadd.f32 0.5, %v1001_v56 }
 0x3bf   :  { %v1568_v58 = vpop.eup %1567 }
 0x3c0   :  { %v1084_v62 = vmul.f32 %v1002_v48, %v2478_v11  ;;  %v1085_v0 = vmul.f32 %v1568_v58, %v960_v57  ;;  %v1215_v11 = vld [vmem:[#allocation6 + $0xd8] sm:$0xff] }
 0x3c1   :  { %v1570_v1 = vpop.eup %1569 }
 0x3c2   :  { %v1086_v2 = vadd.f32 %v1085_v0, %v1084_v62  ;;  %v1082_v3 = vmul.f32 0.5, %v1570_v1 }
 0x3c4   :  { %1571 = vtanh.f32 %v1086_v2  ;;  %v1083_v8 = vadd.f32 0.5, %v1082_v3 }
 0x3ca   :  { %v1572_v19 = vpop.eup %1571 }
 0x3cb   :  { %v1088_v18 = vmul.f32 %v1572_v19, %v1083_v8 }
 0x3cd   :  { %1090 = vst [vmem:[#allocation9 + $0x28] sm:$0xff] %v1088_v18  ;;  %1125 = vmatmul.f32.vlgmr.msra.gmra.mxu0 %v1088_v18  ;;  %1167 = vmatmul.f32.vlgmr.msra.gmra.mxu1 %v1088_v18 }
 0x3ce   :  { %1209 = vmatmul.f32.vlgmr.msra.gmra.mxu2 %v1088_v18  ;;  %1248 = vmatmul.f32.vlgmr.msra.gmra.mxu3 %v1088_v18 }
 0x44a   :  { %v1126_v15 = vpop.f32.mrf.mxu0  ;;  %v1168_v9 = vpop.f32.mrf.mxu1 }
 0x44b   :  { %v1129_v10 = vadd.f32 %v1126_v15, %v1092_v61  ;;  %v1171_v16 = vadd.f32 %v1168_v9, %v1134_v12 }
 0x44d   :  { %v1130_v14 = vmul.f32 0.5, %v1129_v10  ;;  %v1172_v6 = vmul.f32 0.5, %v1171_v16 }
 0x44f   :  { %1573 = vtanh.f32 %v1130_v14 }
 0x450   :  { %1575 = vtanh.f32 %v1172_v6 }
 0x451   :  { %v1210_v13 = vpop.f32.mrf.mxu2  ;;  %v1249_v5 = vpop.f32.mrf.mxu3 }
 0x452   :  { %v1213_v4 = vadd.f32 %v1210_v13, %v1176_v17  ;;  %v1252_v7 = vadd.f32 %v1249_v5, %v1215_v11 }
 0x454   :  { %1577 = vtanh.f32 %v1213_v4  ;;  %v1253_v63 = vmul.f32 0.5, %v1252_v7 }
 0x455   :  { %v1574_v51 = vpop.eup %1573 }
 0x456   :  { %v1576_v54 = vpop.eup %1575  ;;  %v1132_v20 = vmul.f32 0.5, %v1574_v51  ;;  %1579 = vtanh.f32 %v1253_v63 }
 0x457   :  { %v1174_v21 = vmul.f32 0.5, %v1576_v54 }
 0x458   :  { %v1133_v22 = vadd.f32 0.5, %v1132_v20 }
 0x459   :  { %v1175_v23 = vadd.f32 0.5, %v1174_v21 }
 0x45a   :  { %v1578_v24 = vpop.eup %1577 }
 0x45b   :  { %v1257_v25 = vmul.f32 %v1175_v23, %v1086_v2  ;;  %v1258_v26 = vmul.f32 %v1578_v24, %v1133_v22 }
 0x45c   :  { %v1580_v27 = vpop.eup %1579 }
 0x45d   :  { %v1259_v28 = vadd.f32 %v1258_v26, %v1257_v25  ;;  %v1255_v29 = vmul.f32 0.5, %v1580_v27 }
 0x45f   :  { %1581 = vtanh.f32 %v1259_v28  ;;  %v1256_v30 = vadd.f32 0.5, %v1255_v29 }
 0x465   :  { %v1582_v31 = vpop.eup %1581 }
 0x466   :  { %v1261_v32 = vmul.f32 %v1582_v31, %v1256_v30 }
 0x468   :  { %1263 = vst [vmem:[#allocation9 + $0x30] sm:$0xff] %v1261_v32  ;;  %1298 = vmatmul.f32.vlgmr.msrb.gmra.mxu0 %v1261_v32  ;;  %1340 = vmatmul.f32.vlgmr.msrb.gmra.mxu1 %v1261_v32 }
 0x469   :  { %1382 = vmatmul.f32.vlgmr.msrb.gmra.mxu2 %v1261_v32  ;;  %1421 = vmatmul.f32.vlgmr.msrb.gmra.mxu3 %v1261_v32 }
 0x4e5   :  { %v1299_v35 = vpop.f32.mrf.mxu0  ;;  %v1341_v36 = vpop.f32.mrf.mxu1 }
 0x4e6   :  { %v1302_v37 = vadd.f32 %v1299_v35, %v1265_v33  ;;  %v1344_v38 = vadd.f32 %v1341_v36, %v1307_v34 }
 0x4e8   :  { %v1303_v39 = vmul.f32 0.5, %v1302_v37  ;;  %v1345_v40 = vmul.f32 0.5, %v1344_v38 }
 0x4ea   :  { %1583 = vtanh.f32 %v1303_v39 }
 0x4eb   :  { %1585 = vtanh.f32 %v1345_v40 }
 0x4ec   :  { %v1383_v43 = vpop.f32.mrf.mxu2  ;;  %v1422_v44 = vpop.f32.mrf.mxu3 }
 0x4ed   :  { %v1386_v45 = vadd.f32 %v1383_v43, %v1349_v41  ;;  %v1425_v46 = vadd.f32 %v1422_v44, %v1388_v42 }
 0x4ef   :  { %1587 = vtanh.f32 %v1386_v45  ;;  %v1426_v47 = vmul.f32 0.5, %v1425_v46 }
 0x4f0   :  { %v1584_v50 = vpop.eup %1583 }
 0x4f1   :  { %v1586_v55 = vpop.eup %1585  ;;  %v1305_v59 = vmul.f32 0.5, %v1584_v50  ;;  %1589 = vtanh.f32 %v1426_v47 }
 0x4f2   :  { %v1347_v60 = vmul.f32 0.5, %v1586_v55 }
 0x4f3   :  { %v1306_v52 = vadd.f32 0.5, %v1305_v59 }
 0x4f4   :  { %v1348_v53 = vadd.f32 0.5, %v1347_v60 }
 0x4f5   :  { %v1588_v49 = vpop.eup %1587 }
 0x4f6   :  { %v1430_v56 = vmul.f32 %v1348_v53, %v1259_v28  ;;  %v1431_v57 = vmul.f32 %v1588_v49, %v1306_v52 }
 0x4f7   :  { %v1590_v48 = vpop.eup %1589 }
 0x4f8   :  { %v1432_v58 = vadd.f32 %v1431_v57, %v1430_v56  ;;  %v1428_v62 = vmul.f32 0.5, %v1590_v48 }
 0x4fa   :  { %1591 = vtanh.f32 %v1432_v58  ;;  %1445 = vst [vmem:[#allocation12] sm:$0xff] %v1432_v58  ;;  %v1429_v0 = vadd.f32 0.5, %v1428_v62 }
 0x500   :  { %v1592_v1 = vpop.eup %1591 }
 0x501   :  { %v1434_v2 = vmul.f32 %v1592_v1, %v1429_v0 }
 0x503   :  { %1436 = vst [vmem:[#allocation9 + $0x38] sm:$0xff] %v1434_v2 }
 0x504   :  { %1443 = vst [vmem:[#allocation10] sm:$0xff] %v1434_v2  ;;  %1458 = dma.vmem_to_hbm [thread:$0]  %s1451_s1, 1024, %s1453_s29, [#allocation8], %s1729_s2, %s1729_s2, %s1730_s14  }
 0x505   :  { %1469 = dma.vmem_to_hbm [thread:$0]  %s1465_s5, 128, %s1467_s8, [#allocation11]  }
 0x506   :  { %1480 = dma.vmem_to_hbm [thread:$0]  %s1476_s10, 128, %s1478_s13, [#allocation11]  }
 0x507   :  { %1717 = dma.done.wait [#allocation8], 1024  }
 0x508   :  { %1718 = vsyncadd [#allocation8], 4294966272 }
 0x509   :  { %1719 = dma.done.wait [#allocation11], 256  }
 0x50a   :  { %1720 = vsyncadd [#allocation11], 4294967040 }
 0x50b   :  { %1493 = vsyncpa [#allocation7], 1 }
 0x50c   :  { %1494 = vsyncpa [#allocation8], 1 }
 0x50d   :  { %1495 = vsyncpa [#allocation11], 1 }
 0x50e   :  { %1496 = vsyncmov [#allocation3] }
 0x511   :  { %s1497_s3 = vpop.sfrf %1496 }
 0x512   :  { %p1502_p0 = scmp.ne.s32.totalorder %s1497_s3, 0 }
 0x514   :  { %1501 = shalt.err (%p1502_p0)  }

</bundles_post_ra>
